<compile_context>
chip_gen: v5e
topology: v5e:2x2
jax: 0.10.0
libtpu: 0.0.40
codegen_flags: <defaults>
</compile_context>

<pallas_src>
import jax
import jax.numpy as jnp
from jax.experimental import pallas as pl
from jax.experimental.pallas import tpu as pltpu

# Logical (PyTorch) dims.
D_IN, H1, H2, D_OUT = 784, 600, 120, 10   # 784 = int(32 * (48 + 1) / 2)
# Lane-padded fan-out dims (multiples of 128).  K dims are left unpadded.
H1_P, H2_P, D_OUT_P = 640, 128, 128


def _round_up(x, m):
    return (x + m - 1) // m * m


def _tpu_generation():
    try:
        kind = jax.devices()[0].device_kind.lower()
    except Exception:
        return "unknown"
    if "v5" in kind:
        return "v5e"
    if "v6" in kind:
        return "v6e"
    if "v7" in kind or "7x" in kind:
        return "v7x"
    return "unknown"


# generation -> (max batch-tile rows, scoped VMEM limit bytes)
_GEN_CONFIG = {
    "v5e": (1024, 32 << 20),   # MXU-bound; default scoped VMEM is only 16 MiB
    "v6e": (2048, 48 << 20),   # amortize ~0.35us/step overhead with big tiles
    "v7x": (2048, 48 << 20),   # budget per TensorCore (64 MiB physical / TC)
    "unknown": (1024, 32 << 20),
}


def _mlp_kernel(x_ref, w1_ref, b1_ref, w2_ref, b2_ref, w3_ref, b3_ref, o_ref):
    # x arrives f32 straight from HBM; bf16 cast happens here (VPU, hidden
    # under the MXU) so the wrapper never materializes a cast/pad copy.
    x = x_ref[...].astype(jnp.bfloat16)
    # fc1 + ReLU  (bf16 operands, f32 accumulation on the MXU)
    h1 = jnp.dot(x, w1_ref[...], preferred_element_type=jnp.float32) + b1_ref[...]
    h1 = jnp.maximum(h1, 0.0)
    # Dropout2d(p=0.25): identity at inference (eval) time.
    # TODO(synk): training-mode dropout mask (pltpu.prng_*) not implemented.
    # fc2 + ReLU
    h2 = jnp.dot(h1.astype(jnp.bfloat16), w2_ref[...],
                 preferred_element_type=jnp.float32) + b2_ref[...]
    h2 = jnp.maximum(h2, 0.0)
    # fc3 (no activation)
    out = jnp.dot(h2.astype(jnp.bfloat16), w3_ref[...],
                  preferred_element_type=jnp.float32) + b3_ref[...]
    o_ref[...] = out.astype(o_ref.dtype)


def prepare_params(params):
    """One-time prep: zero-pad fan-out dims to lane multiples, cast weights to
    bf16.  K dims (784 for fc1) are left unpadded -- as full-array dims they
    satisfy the (8,128) rule and padding them only inflates DMA."""
    w1, b1, w2, b2, w3, b3 = params

    def pad_w(w, kp, np_):
        k, n = w.shape
        out = jnp.zeros((kp, np_), jnp.bfloat16)
        return out.at[:k, :n].set(w.astype(jnp.bfloat16))

    def pad_b(b, np_):
        n = b.shape[-1]
        out = jnp.zeros((1, np_), jnp.float32)
        return out.at[:, :n].set(b.reshape(1, -1).astype(jnp.float32))

    return (pad_w(w1, D_IN, H1_P), pad_b(b1, H1_P),
            pad_w(w2, H1_P, H2_P), pad_b(b2, H2_P),
            pad_w(w3, H2_P, D_OUT_P), pad_b(b3, D_OUT_P))


@jax.jit
def fashion_cnn_forward(x_nchw, padded_params):
    B = x_nchw.shape[0]
    w1, b1, w2, b2, w3, b3 = padded_params

    gen = _tpu_generation()
    max_tb, vmem_limit = _GEN_CONFIG[gen]

    # Matches torch `input_data.view(B, -1)` (row-major flatten of NCHW).
    # Metadata-only reshape; no cast, no pad, no extra HBM pass.
    x_flat = x_nchw.reshape(B, D_IN)

    # Balanced batch tiles: fewest near-equal tiles of at most max_tb rows.
    num_tiles = pl.cdiv(B, max_tb)
    if gen == "v7x" and B >= 512:
        # Even number of >=2 grid steps so the "parallel" batch axis shards
        # across both v7x TensorCores (no effect on single-TC v5e/v6e).
        num_tiles = max(num_tiles, 2)
        num_tiles += num_tiles % 2
    tb = _round_up(pl.cdiv(B, num_tiles), 8)   # f32 sublane multiple
    grid = (pl.cdiv(B, tb),)                   # partial last block is masked

    # Weights/biases: constant index_map -> VMEM-resident across all steps;
    # Buffered(1) avoids allocating a second (never used) buffer.
    weight_specs = [
        pl.BlockSpec((D_IN, H1_P), lambda i: (0, 0), pipeline_mode=pl.Buffered(1)),
        pl.BlockSpec((1, H1_P), lambda i: (0, 0), pipeline_mode=pl.Buffered(1)),
        pl.BlockSpec((H1_P, H2_P), lambda i: (0, 0), pipeline_mode=pl.Buffered(1)),
        pl.BlockSpec((1, H2_P), lambda i: (0, 0), pipeline_mode=pl.Buffered(1)),
        pl.BlockSpec((H2_P, D_OUT_P), lambda i: (0, 0), pipeline_mode=pl.Buffered(1)),
        pl.BlockSpec((1, D_OUT_P), lambda i: (0, 0), pipeline_mode=pl.Buffered(1)),
    ]

    flops = 2 * B * (D_IN * H1_P + H1_P * H2_P + H2_P * D_OUT_P)
    bytes_accessed = (B * D_IN * 4
                      + (w1.size + w2.size + w3.size) * 2
                      + (b1.size + b2.size + b3.size) * 4
                      + B * D_OUT_P * 4)

    out_p = pl.pallas_call(
        _mlp_kernel,
        out_shape=jax.ShapeDtypeStruct((B, D_OUT_P), jnp.float32),
        grid=grid,
        in_specs=[pl.BlockSpec((tb, D_IN), lambda i: (i, 0))] + weight_specs,
        out_specs=pl.BlockSpec((tb, D_OUT_P), lambda i: (i, 0)),  # lane-dense
        compiler_params=pltpu.CompilerParams(
            dimension_semantics=("parallel",),
            vmem_limit_bytes=vmem_limit),
        cost_estimate=pl.CostEstimate(
            flops=flops, transcendentals=0, bytes_accessed=bytes_accessed),
    )(x_flat, w1, b1, w2, b2, w3, b3)

    return out_p[:, :D_OUT]


def init_params(key):
    # Deterministic init mimicking PyTorch nn.Linear default:
    # U(-1/sqrt(fan_in), 1/sqrt(fan_in)) for both weight and bias.
    # Weights stored as [fan_in, fan_out] so the kernel computes x @ W + b.
    ks = jax.random.split(key, 6)

    def lin(kw, kb, fan_in, fan_out):
        bound = 1.0 / float(fan_in) ** 0.5
        w = jax.random.uniform(kw, (fan_in, fan_out), jnp.float32, -bound, bound)
        b = jax.random.uniform(kb, (1, fan_out), jnp.float32, -bound, bound)
        return w, b

    w1, b1 = lin(ks[0], ks[1], D_IN, H1)
    w2, b2 = lin(ks[2], ks[3], H1, H2)
    w3, b3 = lin(ks[4], ks[5], H2, D_OUT)
    return (w1, b1, w2, b2, w3, b3)


if __name__ == "__main__":
    key = jax.random.PRNGKey(0)
    kx, kp = jax.random.split(key)

    B = 8
    x = jax.random.normal(kx, (B, 1, 28, 28), jnp.float32)  # Fashion-MNIST shape
    params = init_params(kp)
    padded_params = prepare_params(params)

    out = fashion_cnn_forward(x, padded_params)
    out = jax.block_until_ready(out)

    # Pure-JAX reference with the same bf16-weight / f32-accumulation recipe.
    w1, b1, w2, b2, w3, b3 = params
    xf = x.reshape(B, -1).astype(jnp.bfloat16)
    h1 = jnp.maximum(jnp.dot(xf, w1.astype(jnp.bfloat16),
                             preferred_element_type=jnp.float32) + b1, 0.0)
    h2 = jnp.maximum(jnp.dot(h1.astype(jnp.bfloat16), w2.astype(jnp.bfloat16),
                             preferred_element_type=jnp.float32) + b2, 0.0)
    ref = jnp.dot(h2.astype(jnp.bfloat16), w3.astype(jnp.bfloat16),
                  preferred_element_type=jnp.float32) + b3

    # Loose sanity check against the full-f32 math (bf16 quantization only).
    ref32 = jnp.maximum(x.reshape(B, -1) @ w1 + b1, 0.0)
    ref32 = jnp.maximum(ref32 @ w2 + b2, 0.0)
    ref32 = ref32 @ w3 + b3

    assert out.shape == (B, D_OUT)
    assert out.dtype == jnp.float32
    assert jnp.allclose(out, ref, atol=2e-3, rtol=2e-3)
    assert jnp.allclose(out, ref32, atol=1e-1, rtol=1e-1)
    print("KERNEL_OK")
</pallas_src>

<mosaic_0001>
module attributes {stable_mosaic.version = 11 : i64} {
  func.func @_mlp_kernel(%arg0: i32, %arg1: memref<8x784xf32, #tpu.memory_space<vmem>>, %arg2: memref<784x640xbf16, #tpu.memory_space<vmem>>, %arg3: memref<1x640xf32, #tpu.memory_space<vmem>>, %arg4: memref<640x128xbf16, #tpu.memory_space<vmem>>, %arg5: memref<1x128xf32, #tpu.memory_space<vmem>>, %arg6: memref<128x128xbf16, #tpu.memory_space<vmem>>, %arg7: memref<1x128xf32, #tpu.memory_space<vmem>>, %arg8: memref<8x128xf32, #tpu.memory_space<vmem>>) attributes {dimension_semantics = [#tpu.dimension_semantics<parallel>], iteration_bounds = array<i64: 1>, scalar_prefetch = 0 : i64, scratch_operands = 0 : i64, tpu.core_type = #tpu.core_type<tc>, window_params = [{transform_indices = @transform_0, window_bounds = array<i64: 8, 784>}, {pipeline_mode = #tpu.pipeline_mode<synchronous>, transform_indices = @transform_1, window_bounds = array<i64: 784, 640>}, {pipeline_mode = #tpu.pipeline_mode<synchronous>, transform_indices = @transform_2, window_bounds = array<i64: 1, 640>}, {pipeline_mode = #tpu.pipeline_mode<synchronous>, transform_indices = @transform_3, window_bounds = array<i64: 640, 128>}, {pipeline_mode = #tpu.pipeline_mode<synchronous>, transform_indices = @transform_4, window_bounds = array<i64: 1, 128>}, {pipeline_mode = #tpu.pipeline_mode<synchronous>, transform_indices = @transform_5, window_bounds = array<i64: 128, 128>}, {pipeline_mode = #tpu.pipeline_mode<synchronous>, transform_indices = @transform_6, window_bounds = array<i64: 1, 128>}, {transform_indices = @transform_7, window_bounds = array<i64: 8, 128>}]} {
    %c0 = arith.constant 0 : index
    %c0_0 = arith.constant 0 : index
    %0 = vector.load %arg1[%c0, %c0_0] : memref<8x784xf32, #tpu.memory_space<vmem>>, vector<8x784xf32>
    %1 = arith.truncf %0 : vector<8x784xf32> to vector<8x784xbf16>
    %c0_1 = arith.constant 0 : index
    %c0_2 = arith.constant 0 : index
    %2 = vector.load %arg2[%c0_1, %c0_2] : memref<784x640xbf16, #tpu.memory_space<vmem>>, vector<784x640xbf16>
    %cst = arith.constant dense<0.000000e+00> : vector<8x640xf32>
    %3 = tpu.matmul %1, %2, %cst {dimension_numbers = #tpu.dot_dimension_numbers<[1], [0], [0], [1], [0, 0, 1, 1], [], []>} : vector<8x784xbf16>, vector<784x640xbf16>, vector<8x640xf32> -> vector<8x640xf32>
    %c0_3 = arith.constant 0 : index
    %c0_4 = arith.constant 0 : index
    %4 = vector.load %arg3[%c0_3, %c0_4] : memref<1x640xf32, #tpu.memory_space<vmem>>, vector<1x640xf32>
    %5 = vector.broadcast %4 : vector<1x640xf32> to vector<8x640xf32>
    %6 = arith.addf %3, %5 : vector<8x640xf32>
    %cst_5 = arith.constant 0.000000e+00 : f32
    %7 = vector.broadcast %cst_5 : f32 to vector<8x640xf32>
    %8 = arith.maximumf %6, %7 : vector<8x640xf32>
    %9 = arith.truncf %8 : vector<8x640xf32> to vector<8x640xbf16>
    %c0_6 = arith.constant 0 : index
    %c0_7 = arith.constant 0 : index
    %10 = vector.load %arg4[%c0_6, %c0_7] : memref<640x128xbf16, #tpu.memory_space<vmem>>, vector<640x128xbf16>
    %cst_8 = arith.constant dense<0.000000e+00> : vector<8x128xf32>
    %11 = tpu.matmul %9, %10, %cst_8 {dimension_numbers = #tpu.dot_dimension_numbers<[1], [0], [0], [1], [0, 0, 1, 1], [], []>} : vector<8x640xbf16>, vector<640x128xbf16>, vector<8x128xf32> -> vector<8x128xf32>
    %c0_9 = arith.constant 0 : index
    %c0_10 = arith.constant 0 : index
    %12 = vector.load %arg5[%c0_9, %c0_10] : memref<1x128xf32, #tpu.memory_space<vmem>>, vector<1x128xf32>
    %13 = vector.broadcast %12 : vector<1x128xf32> to vector<8x128xf32>
    %14 = arith.addf %11, %13 : vector<8x128xf32>
    %cst_11 = arith.constant 0.000000e+00 : f32
    %15 = vector.broadcast %cst_11 : f32 to vector<8x128xf32>
    %16 = arith.maximumf %14, %15 : vector<8x128xf32>
    %17 = arith.truncf %16 : vector<8x128xf32> to vector<8x128xbf16>
    %c0_12 = arith.constant 0 : index
    %c0_13 = arith.constant 0 : index
    %18 = vector.load %arg6[%c0_12, %c0_13] : memref<128x128xbf16, #tpu.memory_space<vmem>>, vector<128x128xbf16>
    %cst_14 = arith.constant dense<0.000000e+00> : vector<8x128xf32>
    %19 = tpu.matmul %17, %18, %cst_14 {dimension_numbers = #tpu.dot_dimension_numbers<[1], [0], [0], [1], [0, 0, 1, 1], [], []>} : vector<8x128xbf16>, vector<128x128xbf16>, vector<8x128xf32> -> vector<8x128xf32>
    %c0_15 = arith.constant 0 : index
    %c0_16 = arith.constant 0 : index
    %20 = vector.load %arg7[%c0_15, %c0_16] : memref<1x128xf32, #tpu.memory_space<vmem>>, vector<1x128xf32>
    %21 = vector.broadcast %20 : vector<1x128xf32> to vector<8x128xf32>
    %22 = arith.addf %19, %21 : vector<8x128xf32>
    %c0_17 = arith.constant 0 : index
    %c0_18 = arith.constant 0 : index
    %23 = vector.load %arg8[%c0_17, %c0_18] : memref<8x128xf32, #tpu.memory_space<vmem>>, vector<8x128xf32>
    tpu.vector_store %arg8[%c0_17, %c0_18], %22 {strides = array<i32>} : memref<8x128xf32, #tpu.memory_space<vmem>>, vector<8x128xf32>,
    return
  }
  func.func @transform_0(%arg0: i32) -> (i32, i32) {
    %c0_i32 = arith.constant 0 : i32
    %c0_i32_0 = arith.constant 0 : i32
    return %arg0, %c0_i32 : i32, i32
  }
  func.func @transform_1(%arg0: i32) -> (i32, i32) {
    %c0_i32 = arith.constant 0 : i32
    %c0_i32_0 = arith.constant 0 : i32
    %c0_i32_1 = arith.constant 0 : i32
    return %c0_i32, %c0_i32_0 : i32, i32
  }
  func.func @transform_2(%arg0: i32) -> (i32, i32) {
    %c0_i32 = arith.constant 0 : i32
    %c0_i32_0 = arith.constant 0 : i32
    %c0_i32_1 = arith.constant 0 : i32
    return %c0_i32, %c0_i32_0 : i32, i32
  }
  func.func @transform_3(%arg0: i32) -> (i32, i32) {
    %c0_i32 = arith.constant 0 : i32
    %c0_i32_0 = arith.constant 0 : i32
    %c0_i32_1 = arith.constant 0 : i32
    return %c0_i32, %c0_i32_0 : i32, i32
  }
  func.func @transform_4(%arg0: i32) -> (i32, i32) {
    %c0_i32 = arith.constant 0 : i32
    %c0_i32_0 = arith.constant 0 : i32
    %c0_i32_1 = arith.constant 0 : i32
    return %c0_i32, %c0_i32_0 : i32, i32
  }
  func.func @transform_5(%arg0: i32) -> (i32, i32) {
    %c0_i32 = arith.constant 0 : i32
    %c0_i32_0 = arith.constant 0 : i32
    %c0_i32_1 = arith.constant 0 : i32
    return %c0_i32, %c0_i32_0 : i32, i32
  }
  func.func @transform_6(%arg0: i32) -> (i32, i32) {
    %c0_i32 = arith.constant 0 : i32
    %c0_i32_0 = arith.constant 0 : i32
    %c0_i32_1 = arith.constant 0 : i32
    return %c0_i32, %c0_i32_0 : i32, i32
  }
  func.func @transform_7(%arg0: i32) -> (i32, i32) {
    %c0_i32 = arith.constant 0 : i32
    %c0_i32_0 = arith.constant 0 : i32
    return %arg0, %c0_i32 : i32, i32
  }
}

</mosaic_0001>

<bundles_post_ra>
// kernel: fashion_cnn_forward.1
= control target key start
LH: loop header
LB: loop body
LE: loop exit
PB: predicated region body
PF: predicated region fallthrough
CT: control target
= control target key end

     0   :  { %12 = vsyncpa [#allocation3], 0  ;;  %s4434_s0 = inlined_call_operand.vmem [shape: f32[8,784], index: 0, kind: input, shape index: {}]   ;;  %s4435_s1 = inlined_call_operand.hbm [shape: bf16[784,640], index: 1, kind: input, shape index: {}]   ;;  %s4436_s2 = inlined_call_operand.vmem [shape: f32[1,640], index: 2, kind: input, shape index: {}]   ;;  %s4437_s3 = inlined_call_operand.vmem [shape: bf16[640,128], index: 3, kind: input, shape index: {}]   ;;  %s4438_s4 = inlined_call_operand.vmem [shape: f32[1,128], index: 4, kind: input, shape index: {}]   ;;  %s4439_s5 = inlined_call_operand.vmem [shape: bf16[128,128], index: 5, kind: input, shape index: {}]   ;;  %s4440_s6 = inlined_call_operand.vmem [shape: f32[1,128], index: 6, kind: input, shape index: {}]   ;;  %s4441_s7 = inlined_call_operand.hbm [shape: f32[8,128], index: 7, kind: output, shape index: {}]  }
   0x1   :  { %13 = vsyncpa [#allocation4], 0  ;;  %s20_s26 = sshll.u32 %s4435_s1, 4  ;;  %s4125_s27 = smov [#allocation2]   ;;  %s21_s26 = int_to_ptr.hbm [resolvable:$true] %s20_s26 }
   0x2   :  { %s22_s28 = sshll.u32 %s4125_s27, 4  ;;  %s4126_s29 = smov 320   ;;  %s23_s28 = int_to_ptr.vmem [resolvable:$true] %s22_s28 }
   0x3   :  { %s4127_s30 = smov 20  }
   0x4   :  { %28 = dma.hbm_to_vmem [thread:$0]  %s21_s26, 31360, %s23_s28, [#allocation3], %s4126_s29, %s4126_s29, %s4127_s30  }
   0x5   :  { %4121 = dma.done.wait [#allocation3], 31360  }
   0x6   :  { %4122 = vsyncadd [#allocation3], 4294935936  ;;  %v2739_v0 = vld [vmem:[#allocation2 + $0x118] sm:$0xf]  ;;  %v3811_v1 = vld [vmem:[#allocation2 + $0x128] sm:$0xf0] }
   0x7   :  { %v2899_v2 = vld [vmem:[#allocation2 + $0x258] sm:$0xf]  ;;  %v2740_v3 = vor.u32 %v3811_v1, %v2739_v0  ;;  %v3851_v4 = vld [vmem:[#allocation2 + $0x268] sm:$0xf0]  ;;  %v2719_v11 = vld [vmem:[#allocation2 + $0xf0] sm:$0xf] }
   0x8   :  { %v3059_v5 = vld [vmem:[#allocation2 + $0x398] sm:$0xf]  ;;  %v3891_v6 = vld [vmem:[#allocation2 + $0x3a8] sm:$0xf0]  ;;  %v2900_v7 = vor.u32 %v3851_v4, %v2899_v2  ;;  %v3806_v13 = vld [vmem:[#allocation2 + $0x100] sm:$0xf0] }
   0x9   :  { %v3060_v8 = vor.u32 %v3891_v6, %v3059_v5  ;;  %v3219_v9 = vld [vmem:[#allocation2 + $0x4d8] sm:$0xf]  ;;  %v3931_v10 = vld [vmem:[#allocation2 + $0x4e8] sm:$0xf0]  ;;  %1642 = vmatpush.bf16.msra.mxu0 %v2740_v3  ;;  %v2879_v14 = vld [vmem:[#allocation2 + $0x230] sm:$0xf]  ;;  %v2720_v16 = vor.u32 %v3806_v13, %v2719_v11 }
   0xa   :  { %v3220_v12 = vor.u32 %v3931_v10, %v3219_v9  ;;  %v3846_v15 = vld [vmem:[#allocation2 + $0x240] sm:$0xf0]  ;;  %1655 = vmatpush.bf16.msra.mxu1 %v2900_v7  ;;  %v3039_v18 = vld [vmem:[#allocation2 + $0x370] sm:$0xf]  ;;  %v2699_v23 = vld [vmem:[#allocation2 + $0xc8] sm:$0xf] }
   0xb   :  { %1668 = vmatpush.bf16.msra.mxu2 %v3060_v8  ;;  %v2880_v17 = vor.u32 %v3846_v15, %v2879_v14  ;;  %v3886_v19 = vld [vmem:[#allocation2 + $0x380] sm:$0xf0]  ;;  %v3199_v20 = vld [vmem:[#allocation2 + $0x4b0] sm:$0xf]  ;;  %v3801_v24 = vld [vmem:[#allocation2 + $0xd8] sm:$0xf0] }
   0xc   :  { %1681 = vmatpush.bf16.msra.mxu3 %v3220_v12  ;;  %v3040_v21 = vor.u32 %v3886_v19, %v3039_v18  ;;  %v3926_v22 = vld [vmem:[#allocation2 + $0x4c0] sm:$0xf0]  ;;  %v2859_v26 = vld [vmem:[#allocation2 + $0x208] sm:$0xf]  ;;  %v3841_v27 = vld [vmem:[#allocation2 + $0x218] sm:$0xf0]  ;;  %v2700_v29 = vor.u32 %v3801_v24, %v2699_v23 }
   0xd   :  { %v3200_v25 = vor.u32 %v3926_v22, %v3199_v20  ;;  %v3019_v28 = vld [vmem:[#allocation2 + $0x348] sm:$0xf]  ;;  %1643 = vmatpush.bf16.msra.mxu0 %v2720_v16  ;;  %v3881_v30 = vld [vmem:[#allocation2 + $0x358] sm:$0xf0]  ;;  %v2860_v33 = vor.u32 %v3841_v27, %v2859_v26  ;;  %v2679_v35 = vld [vmem:[#allocation2 + $0xa0] sm:$0xf] }
   0xe   :  { %v3179_v31 = vld [vmem:[#allocation2 + $0x488] sm:$0xf]  ;;  %v3921_v32 = vld [vmem:[#allocation2 + $0x498] sm:$0xf0]  ;;  %1656 = vmatpush.bf16.msra.mxu1 %v2880_v17  ;;  %v3020_v34 = vor.u32 %v3881_v30, %v3019_v28  ;;  %v3796_v36 = vld [vmem:[#allocation2 + $0xb0] sm:$0xf0] }
   0xf   :  { %1669 = vmatpush.bf16.msra.mxu2 %v3040_v21  ;;  %v2839_v37 = vld [vmem:[#allocation2 + $0x1e0] sm:$0xf]  ;;  %v3180_v38 = vor.u32 %v3921_v32, %v3179_v31  ;;  %v3836_v39 = vld [vmem:[#allocation2 + $0x1f0] sm:$0xf0]  ;;  %v2680_v44 = vor.u32 %v3796_v36, %v2679_v35  ;;  %v2659_v47 = vld [vmem:[#allocation2 + $0x78] sm:$0xf] }
  0x10   :  { %1682 = vmatpush.bf16.msra.mxu3 %v3200_v25  ;;  %v2999_v40 = vld [vmem:[#allocation2 + $0x320] sm:$0xf]  ;;  %v3876_v41 = vld [vmem:[#allocation2 + $0x330] sm:$0xf0]  ;;  %v2840_v45 = vor.u32 %v3836_v39, %v2839_v37  ;;  %v3791_v48 = vld [vmem:[#allocation2 + $0x88] sm:$0xf0] }
  0x11   :  { %v3159_v42 = vld [vmem:[#allocation2 + $0x460] sm:$0xf]  ;;  %v3916_v43 = vld [vmem:[#allocation2 + $0x470] sm:$0xf0]  ;;  %1644 = vmatpush.bf16.msra.mxu0 %v2700_v29  ;;  %v3000_v46 = vor.u32 %v3876_v41, %v2999_v40  ;;  %v2819_v49 = vld [vmem:[#allocation2 + $0x1b8] sm:$0xf]  ;;  %v2660_v56 = vor.u32 %v3791_v48, %v2659_v47 }
  0x12   :  { %1657 = vmatpush.bf16.msra.mxu1 %v2860_v33  ;;  %v3160_v50 = vor.u32 %v3916_v43, %v3159_v42  ;;  %v3831_v51 = vld [vmem:[#allocation2 + $0x1c8] sm:$0xf0]  ;;  %v2979_v52 = vld [vmem:[#allocation2 + $0x2f8] sm:$0xf]  ;;  %v2639_v59 = vld [vmem:[#allocation2 + $0x50] sm:$0xf] }
  0x13   :  { %1670 = vmatpush.bf16.msra.mxu2 %v3020_v34  ;;  %v3871_v53 = vld [vmem:[#allocation2 + $0x308] sm:$0xf0]  ;;  %v3139_v54 = vld [vmem:[#allocation2 + $0x438] sm:$0xf]  ;;  %v2820_v57 = vor.u32 %v3831_v51, %v2819_v49  ;;  %v3786_v60 = vld [vmem:[#allocation2 + $0x60] sm:$0xf0] }
  0x14   :  { %1683 = vmatpush.bf16.msra.mxu3 %v3180_v38  ;;  %v3911_v55 = vld [vmem:[#allocation2 + $0x448] sm:$0xf0]  ;;  %v2980_v58 = vor.u32 %v3871_v53, %v2979_v52  ;;  %v2799_v61 = vld [vmem:[#allocation2 + $0x190] sm:$0xf]  ;;  %v3826_v63 = vld [vmem:[#allocation2 + $0x1a0] sm:$0xf0]  ;;  %v2640_v4 = vor.u32 %v3786_v60, %v2639_v59 }
  0x15   :  { %1645 = vmatpush.bf16.msra.mxu0 %v2680_v44  ;;  %v3140_v62 = vor.u32 %v3911_v55, %v3139_v54  ;;  %v2959_v0 = vld [vmem:[#allocation2 + $0x2d0] sm:$0xf]  ;;  %v3866_v1 = vld [vmem:[#allocation2 + $0x2e0] sm:$0xf0]  ;;  %v2800_v5 = vor.u32 %v3826_v63, %v2799_v61  ;;  %v2619_v7 = vld [vmem:[#allocation2 + $0x28] sm:$0xf] }
  0x16   :  { %1658 = vmatpush.bf16.msra.mxu1 %v2840_v45  ;;  %v3119_v2 = vld [vmem:[#allocation2 + $0x410] sm:$0xf]  ;;  %v3906_v3 = vld [vmem:[#allocation2 + $0x420] sm:$0xf0]  ;;  %v2960_v6 = vor.u32 %v3866_v1, %v2959_v0  ;;  %v3781_v8 = vld [vmem:[#allocation2 + $0x38] sm:$0xf0] }
  0x17   :  { %1671 = vmatpush.bf16.msra.mxu2 %v3000_v46  ;;  %v2779_v9 = vld [vmem:[#allocation2 + $0x168] sm:$0xf]  ;;  %v3120_v10 = vor.u32 %v3906_v3, %v3119_v2  ;;  %v3821_v11 = vld [vmem:[#allocation2 + $0x178] sm:$0xf0]  ;;  %v2620_v16 = vor.u32 %v3781_v8, %v2619_v7  ;;  %v2599_v17 = vld [vmem:[#allocation2] sm:$0xf] }
  0x18   :  { %1684 = vmatpush.bf16.msra.mxu3 %v3160_v50  ;;  %v2939_v12 = vld [vmem:[#allocation2 + $0x2a8] sm:$0xf]  ;;  %v3861_v13 = vld [vmem:[#allocation2 + $0x2b8] sm:$0xf0]  ;;  %v3776_v18 = vld [vmem:[#allocation2 + $0x10] sm:$0xf0]  ;;  %v2780_v19 = vor.u32 %v3821_v11, %v2779_v9 }
  0x19   :  { %1646 = vmatpush.bf16.msra.mxu0 %v2660_v56  ;;  %v3099_v14 = vld [vmem:[#allocation2 + $0x3e8] sm:$0xf]  ;;  %v3901_v15 = vld [vmem:[#allocation2 + $0x3f8] sm:$0xf0]  ;;  %v2940_v20 = vor.u32 %v3861_v13, %v2939_v12  ;;  %v2759_v21 = vld [vmem:[#allocation2 + $0x140] sm:$0xf]  ;;  %v2600_v31 = vor.u32 %v3776_v18, %v2599_v17 }
  0x1a   :  { %1659 = vmatpush.bf16.msra.mxu1 %v2820_v57  ;;  %v3816_v22 = vld [vmem:[#allocation2 + $0x150] sm:$0xf0]  ;;  %v2919_v23 = vld [vmem:[#allocation2 + $0x280] sm:$0xf]  ;;  %v3100_v24 = vor.u32 %v3901_v15, %v3099_v14  ;;  %v3379_v28 = vld [vmem:[#allocation2 + $0x618] sm:$0xf] }
  0x1b   :  { %1672 = vmatpush.bf16.msra.mxu2 %v2980_v58  ;;  %v3856_v25 = vld [vmem:[#allocation2 + $0x290] sm:$0xf0]  ;;  %v3079_v26 = vld [vmem:[#allocation2 + $0x3c0] sm:$0xf]  ;;  %v3971_v29 = vld [vmem:[#allocation2 + $0x628] sm:$0xf0]  ;;  %v2760_v35 = vor.u32 %v3816_v22, %v2759_v21 }
  0x1c   :  { %1685 = vmatpush.bf16.msra.mxu3 %v3140_v62  ;;  %v3896_v27 = vld [vmem:[#allocation2 + $0x3d0] sm:$0xf0]  ;;  %v3539_v30 = vld [vmem:[#allocation2 + $0x758] sm:$0xf]  ;;  %v4011_v32 = vld [vmem:[#allocation2 + $0x768] sm:$0xf0]  ;;  %v2920_v36 = vor.u32 %v3856_v25, %v2919_v23  ;;  %v3380_v40 = vor.u32 %v3971_v29, %v3379_v28 }
  0x1d   :  { %1647 = vmatpush.bf16.msra.mxu0 %v2640_v4  ;;  %v3809_v33 = vld [vmem:[#allocation2 + $0x11c] sm:$0xf]  ;;  %v2741_v34 = vld [vmem:[#allocation2 + $0x12c] sm:$0xf0]  ;;  %v3559_v37 = vld [vmem:[#allocation2 + $0x780] sm:$0xf]  ;;  %v3080_v39 = vor.u32 %v3896_v27, %v3079_v26  ;;  %v3540_v44 = vor.u32 %v4011_v32, %v3539_v30 }
  0x1e   :  { %1660 = vmatpush.bf16.msra.mxu1 %v2800_v5  ;;  %v4016_v38 = vld [vmem:[#allocation2 + $0x790] sm:$0xf0]  ;;  %v3849_v42 = vld [vmem:[#allocation2 + $0x25c] sm:$0xf]  ;;  %v2901_v43 = vld [vmem:[#allocation2 + $0x26c] sm:$0xf0]  ;;  %v2744_v45 = vor.u32 %v3809_v33, %v2741_v34 }
  0x1f   :  { %1673 = vmatpush.bf16.msra.mxu2 %v2960_v6  ;;  %v46_v41 = vld [vmem:[%s4434_s0 + $0x10] sm:$0xff]  ;;  %v3966_v47 = vld [vmem:[#allocation2 + $0x600] sm:$0xf0]  ;;  %v3560_v49 = vor.u32 %v4016_v38, %v3559_v37  ;;  %v2721_v52 = vld [vmem:[#allocation2 + $0x104] sm:$0xf0]  ;;  %v2904_v55 = vor.u32 %v3849_v42, %v2901_v43  ;;  %vm1638_vm0 = vcmask 130048  }
  0x20   :  { %1686 = vmatpush.bf16.msra.mxu3 %v3120_v10  ;;  %v3359_v46 = vld [vmem:[#allocation2 + $0x5f0] sm:$0xf]  ;;  %v4006_v50 = vld [vmem:[#allocation2 + $0x740] sm:$0xf0]  ;;  %v3804_v51 = vld [vmem:[#allocation2 + $0xf4] sm:$0xf]  ;;  %v4175_v53 = vpack.c.bf16 %v46_v41, %v46_v41 }
  0x21   :  { %1648 = vmatpush.bf16.msra.mxu0 %v2620_v16  ;;  %v3519_v48 = vld [vmem:[#allocation2 + $0x730] sm:$0xf]  ;;  %v44_v54 = vld [vmem:[%s4434_s0] sm:$0xff]  ;;  %v3360_v56 = vor.u32 %v3966_v47, %v3359_v46  ;;  %v3844_v57 = vld [vmem:[#allocation2 + $0x234] sm:$0xf]  ;;  %v2724_v62 = vor.u32 %v3804_v51, %v2721_v52  ;;  %s4128_s17 = smov [#allocation5]  }
  0x22   :  { %1661 = vmatpush.bf16.msra.mxu1 %v2780_v19  ;;  %v2881_v58 = vld [vmem:[#allocation2 + $0x244] sm:$0xf0]  ;;  %v4180_v60 = vpack.c.bf16 %v44_v54, %v44_v54  ;;  %v3520_v61 = vor.u32 %v4006_v50, %v3519_v48  ;;  %v3961_v63 = vld [vmem:[#allocation2 + $0x5d8] sm:$0xf0]  ;;  %v3799_v2 = vld [vmem:[#allocation2 + $0xcc] sm:$0xf] }
  0x23   :  { %1674 = vmatpush.bf16.msra.mxu2 %v2940_v20  ;;  %v3339_v59 = vld [vmem:[#allocation2 + $0x5c8] sm:$0xf]  ;;  %v4001_v1 = vld [vmem:[#allocation2 + $0x718] sm:$0xf0]  ;;  %v2701_v3 = vld [vmem:[#allocation2 + $0xdc] sm:$0xf0]  ;;  %v2884_v6 = vor.u32 %v3844_v57, %v2881_v58 }
  0x24   :  { %1687 = vmatpush.bf16.msra.mxu3 %v3100_v24  ;;  %v3499_v0 = vld [vmem:[#allocation2 + $0x708] sm:$0xf]  ;;  %v3340_v7 = vor.u32 %v3961_v63, %v3339_v59  ;;  %v3839_v8 = vld [vmem:[#allocation2 + $0x20c] sm:$0xf]  ;;  %v2861_v9 = vld [vmem:[#allocation2 + $0x21c] sm:$0xf0]  ;;  %v2704_v12 = vor.u32 %v3799_v2, %v2701_v3 }
  0x25   :  { %1649 = vmatpush.bf16.msra.mxu0 %v2600_v31  ;;  %v45_v4 = vld [vmem:[%s4434_s0 + $0x8] sm:$0xff]  ;;  %v3319_v10 = vld [vmem:[#allocation2 + $0x5a0] sm:$0xf]  ;;  %v3500_v11 = vor.u32 %v4001_v1, %v3499_v0  ;;  %v3956_v13 = vld [vmem:[#allocation2 + $0x5b0] sm:$0xf0]  ;;  %v2864_v20 = vor.u32 %v3839_v8, %v2861_v9  ;;  %s2585_s18 = sshll.u32 %s4128_s17, 4  ;;  %s2586_s18 = int_to_ptr.vmem [resolvable:$true] %s2585_s18 }
  0x26   :  { %1662 = vmatpush.bf16.msra.mxu1 %v2760_v35  ;;  %v4187_v5 = vpack.c.bf16 %v45_v4, %v45_v4  ;;  %v3479_v14 = vld [vmem:[#allocation2 + $0x6e0] sm:$0xf]  ;;  %v47_v15 = vld [vmem:[%s4434_s0 + $0x18] sm:$0xff]  ;;  %v3996_v16 = vld [vmem:[#allocation2 + $0x6f0] sm:$0xf0]  ;;  %v3320_v21 = vor.u32 %v3956_v13, %v3319_v10 }
  0x27   :  { %1675 = vmatpush.bf16.msra.mxu2 %v2920_v36  ;;  %v3794_v17 = vld [vmem:[#allocation2 + $0xa4] sm:$0xf]  ;;  %v2681_v18 = vld [vmem:[#allocation2 + $0xb4] sm:$0xf0]  ;;  %v4193_v19 = vpack.c.bf16 %v47_v15, %v47_v15  ;;  %v3480_v24 = vor.u32 %v3996_v16, %v3479_v14  ;;  %v3951_v27 = vld [vmem:[#allocation2 + $0x588] sm:$0xf0] }
  0x28   :  { %1688 = vmatpush.bf16.msra.mxu3 %v3080_v39  ;;  %1650 = vmatmul.bf16.vlgmr.msra.gmra.mxu0 %v4180_v60  ;;  %v3834_v22 = vld [vmem:[#allocation2 + $0x1e4] sm:$0xf]  ;;  %v2841_v23 = vld [vmem:[#allocation2 + $0x1f4] sm:$0xf0]  ;;  %v2684_v25 = vor.u32 %v3794_v17, %v2681_v18  ;;  %v3991_v29 = vld [vmem:[#allocation2 + $0x6c8] sm:$0xf0] }
  0x29   :  { %1694 = vmatpush.bf16.msrb.mxu0 %v3380_v40  ;;  %1663 = vmatmul.bf16.vlgmr.msra.gmra.mxu1 %v4187_v5  ;;  %v3299_v26 = vld [vmem:[#allocation2 + $0x578] sm:$0xf]  ;;  %v3789_v30 = vld [vmem:[#allocation2 + $0x7c] sm:$0xf]  ;;  %v2661_v31 = vld [vmem:[#allocation2 + $0x8c] sm:$0xf0]  ;;  %v2844_v32 = vor.u32 %v3834_v22, %v2841_v23 }
  0x2a   :  { %1707 = vmatpush.bf16.msrb.mxu1 %v3540_v44  ;;  %1676 = vmatmul.bf16.vlgmr.msra.gmra.mxu2 %v4175_v53  ;;  %v3459_v28 = vld [vmem:[#allocation2 + $0x6b8] sm:$0xf]  ;;  %v3300_v33 = vor.u32 %v3951_v27, %v3299_v26  ;;  %v3829_v34 = vld [vmem:[#allocation2 + $0x1bc] sm:$0xf]  ;;  %v2821_v35 = vld [vmem:[#allocation2 + $0x1cc] sm:$0xf0]  ;;  %v2664_v38 = vor.u32 %v3789_v30, %v2661_v31 }
  0x2b   :  { %1727 = vmatpush.bf16.msrb.mxu2 %v3560_v49  ;;  %1689 = vmatmul.bf16.vlgmr.msra.gmra.mxu3 %v4193_v19  ;;  %v50_v36 = vld [vmem:[%s4434_s0 + $0x30] sm:$0xff]  ;;  %v3460_v37 = vor.u32 %v3991_v29, %v3459_v28  ;;  %v3946_v40 = vld [vmem:[#allocation2 + $0x560] sm:$0xf0]  ;;  %v2641_v44 = vld [vmem:[#allocation2 + $0x64] sm:$0xf0]  ;;  %v2824_v46 = vor.u32 %v3829_v34, %v2821_v35 }
  0x2c   :  { %1733 = vmatpush.bf16.msrb.mxu3 %v2744_v45  ;;  %v3279_v39 = vld [vmem:[#allocation2 + $0x550] sm:$0xf]  ;;  %v3986_v42 = vld [vmem:[#allocation2 + $0x6a0] sm:$0xf0]  ;;  %v3784_v43 = vld [vmem:[#allocation2 + $0x54] sm:$0xf]  ;;  %v4199_v45 = vpack.c.bf16 %v50_v36, %v50_v36 }
  0x2d   :  { %1695 = vmatpush.bf16.msrb.mxu0 %v3360_v56  ;;  %v3439_v41 = vld [vmem:[#allocation2 + $0x690] sm:$0xf]  ;;  %v3280_v47 = vor.u32 %v3946_v40, %v3279_v39  ;;  %v3824_v48 = vld [vmem:[#allocation2 + $0x194] sm:$0xf]  ;;  %v2801_v49 = vld [vmem:[#allocation2 + $0x1a4] sm:$0xf0]  ;;  %v2644_v51 = vor.u32 %v3784_v43, %v2641_v44 }
  0x2e   :  { %1708 = vmatpush.bf16.msrb.mxu1 %v3520_v61  ;;  %v3440_v50 = vor.u32 %v3986_v42, %v3439_v41  ;;  %v3259_v52 = vld [vmem:[#allocation2 + $0x528] sm:$0xf]  ;;  %v3941_v54 = vld [vmem:[#allocation2 + $0x538] sm:$0xf0]  ;;  %v3779_v57 = vld [vmem:[#allocation2 + $0x2c] sm:$0xf]  ;;  %v2804_v59 = vor.u32 %v3824_v48, %v2801_v49 }
  0x2f   :  { %1746 = vmatpush.bf16.msra.mxu2 %v2904_v55  ;;  %v3419_v55 = vld [vmem:[#allocation2 + $0x668] sm:$0xf]  ;;  %v3981_v56 = vld [vmem:[#allocation2 + $0x678] sm:$0xf0]  ;;  %v2621_v58 = vld [vmem:[#allocation2 + $0x3c] sm:$0xf0]  ;;  %v3260_v61 = vor.u32 %v3941_v54, %v3259_v52 }
  0x30   :  { %1734 = vmatpush.bf16.msrb.mxu3 %v2724_v62  ;;  %v3819_v62 = vld [vmem:[#allocation2 + $0x16c] sm:$0xf]  ;;  %v2781_v63 = vld [vmem:[#allocation2 + $0x17c] sm:$0xf0]  ;;  %v3420_v1 = vor.u32 %v3981_v56, %v3419_v55  ;;  %v2624_v2 = vor.u32 %v3779_v57, %v2621_v58  ;;  %v3936_v3 = vld [vmem:[#allocation2 + $0x510] sm:$0xf0] }
  0x31   :  { %1696 = vmatpush.bf16.msrb.mxu0 %v3340_v7  ;;  %v3239_v0 = vld [vmem:[#allocation2 + $0x500] sm:$0xf]  ;;  %v3774_v7 = vld [vmem:[#allocation2 + $0x4] sm:$0xf]  ;;  %v2601_v8 = vld [vmem:[#allocation2 + $0x14] sm:$0xf0]  ;;  %v2784_v13 = vor.u32 %v3819_v62, %v2781_v63 }
  0x32   :  { %1709 = vmatpush.bf16.msrb.mxu1 %v3500_v11  ;;  %v3399_v4 = vld [vmem:[#allocation2 + $0x640] sm:$0xf]  ;;  %v3889_v9 = vld [vmem:[#allocation2 + $0x39c] sm:$0xf]  ;;  %v3061_v10 = vld [vmem:[#allocation2 + $0x3ac] sm:$0xf0]  ;;  %v3240_v14 = vor.u32 %v3936_v3, %v3239_v0 }
  0x33   :  { %1747 = vmatpush.bf16.msra.mxu2 %v2884_v6  ;;  %v3976_v6 = vld [vmem:[#allocation2 + $0x650] sm:$0xf0]  ;;  %v3929_v11 = vld [vmem:[#allocation2 + $0x4dc] sm:$0xf]  ;;  %v3381_v16 = vld [vmem:[#allocation2 + $0x62c] sm:$0xf0] }
  0x34   :  { %1735 = vmatpush.bf16.msrb.mxu3 %v2704_v12  ;;  %v3221_v12 = vld [vmem:[#allocation2 + $0x4ec] sm:$0xf0]  ;;  %v3969_v15 = vld [vmem:[#allocation2 + $0x61c] sm:$0xf]  ;;  %v48_v17 = vld [vmem:[%s4434_s0 + $0x20] sm:$0xff]  ;;  %v3400_v18 = vor.u32 %v3976_v6, %v3399_v4 }
  0x35   :  { %1697 = vmatpush.bf16.msrb.mxu0 %v3320_v21  ;;  %v3814_v21 = vld [vmem:[#allocation2 + $0x144] sm:$0xf]  ;;  %v2761_v22 = vld [vmem:[#allocation2 + $0x154] sm:$0xf0]  ;;  %v49_v23 = vld [vmem:[%s4434_s0 + $0x28] sm:$0xff]  ;;  %v3384_v29 = vor.u32 %v3969_v15, %v3381_v16  ;;  %v4209_v30 = vpack.c.bf16 %v48_v17, %v48_v17  ;;  %s2587_s0 = sshll.u32 %s4441_s7, 4  ;;  %s2588_s0 = int_to_ptr.hbm [resolvable:$true] %s2587_s0 }
  0x36   :  { %1710 = vmatpush.bf16.msrb.mxu1 %v3480_v24  ;;  %v3064_v24 = vor.u32 %v3889_v9, %v3061_v10  ;;  %v4009_v26 = vld [vmem:[#allocation2 + $0x75c] sm:$0xf]  ;;  %v3541_v27 = vld [vmem:[#allocation2 + $0x76c] sm:$0xf0]  ;;  %v3884_v28 = vld [vmem:[#allocation2 + $0x374] sm:$0xf]  ;;  %v2764_v34 = vor.u32 %v3814_v21, %v2761_v22  ;;  %v4211_v35 = vpack.c.bf16 %v49_v23, %v49_v23 }
  0x37   :  { %1748 = vmatpush.bf16.msra.mxu2 %v2864_v20  ;;  %v2604_v20 = vor.u32 %v3774_v7, %v2601_v8  ;;  %v3041_v31 = vld [vmem:[#allocation2 + $0x384] sm:$0xf0]  ;;  %v3964_v36 = vld [vmem:[#allocation2 + $0x5f4] sm:$0xf]  ;;  %v3879_v43 = vld [vmem:[#allocation2 + $0x34c] sm:$0xf] }
  0x38   :  { %1736 = vmatpush.bf16.msrb.mxu3 %v2684_v25  ;;  %v3224_v25 = vor.u32 %v3929_v11, %v3221_v12  ;;  %v3044_v39 = vor.u32 %v3884_v28, %v3041_v31  ;;  %v4004_v41 = vld [vmem:[#allocation2 + $0x734] sm:$0xf]  ;;  %v3521_v42 = vld [vmem:[#allocation2 + $0x744] sm:$0xf0]  ;;  %v3181_v48 = vld [vmem:[#allocation2 + $0x49c] sm:$0xf0] }
  0x39   :  { %1698 = vmatpush.bf16.msrb.mxu0 %v3300_v33  ;;  %v3201_v33 = vld [vmem:[#allocation2 + $0x4c4] sm:$0xf0]  ;;  %v3959_v49 = vld [vmem:[#allocation2 + $0x5cc] sm:$0xf]  ;;  %v3501_v56 = vld [vmem:[#allocation2 + $0x71c] sm:$0xf0] }
  0x3a   :  { %1711 = vmatpush.bf16.msrb.mxu1 %v3460_v37  ;;  %3577 = vmatmul.msk.bf16.vlgmr.msrb.gmra.mxu2 %vm1638_vm0, %v4199_v45  ;;  %v3361_v37 = vld [vmem:[#allocation2 + $0x604] sm:$0xf0]  ;;  %v3999_v55 = vld [vmem:[#allocation2 + $0x70c] sm:$0xf]  ;;  %v3874_v57 = vld [vmem:[#allocation2 + $0x324] sm:$0xf] }
  0x3b   :  { %1749 = vmatpush.bf16.msra.mxu2 %v2844_v32  ;;  %v3924_v32 = vld [vmem:[#allocation2 + $0x4b4] sm:$0xf]  ;;  %v3364_v44 = vor.u32 %v3964_v36, %v3361_v37  ;;  %v3161_v62 = vld [vmem:[#allocation2 + $0x474] sm:$0xf0]  ;;  %v3954_v63 = vld [vmem:[#allocation2 + $0x5a4] sm:$0xf] }
  0x3c   :  { %1737 = vmatpush.bf16.msrb.mxu3 %v2664_v38  ;;  %v3544_v38 = vor.u32 %v4009_v26, %v3541_v27  ;;  %v3204_v40 = vor.u32 %v3924_v32, %v3201_v33  ;;  %v3321_v0 = vld [vmem:[#allocation2 + $0x5b4] sm:$0xf0]  ;;  %v3994_v4 = vld [vmem:[#allocation2 + $0x6e4] sm:$0xf]  ;;  %v3869_v7 = vld [vmem:[#allocation2 + $0x2fc] sm:$0xf] }
  0x3d   :  { %1699 = vmatpush.bf16.msrb.mxu0 %v3280_v47  ;;  %v3919_v47 = vld [vmem:[#allocation2 + $0x48c] sm:$0xf]  ;;  %v3481_v6 = vld [vmem:[#allocation2 + $0x6f4] sm:$0xf0]  ;;  %v3324_v8 = vor.u32 %v3954_v63, %v3321_v0  ;;  %v2981_v9 = vld [vmem:[#allocation2 + $0x30c] sm:$0xf0] }
  0x3e   :  { %1712 = vmatpush.bf16.msrb.mxu1 %v3440_v50  ;;  %v3341_v50 = vld [vmem:[#allocation2 + $0x5dc] sm:$0xf0]  ;;  %v3184_v54 = vor.u32 %v3919_v47, %v3181_v48  ;;  %v3909_v10 = vld [vmem:[#allocation2 + $0x43c] sm:$0xf]  ;;  %v3141_v11 = vld [vmem:[#allocation2 + $0x44c] sm:$0xf0]  ;;  %v2984_v15 = vor.u32 %v3869_v7, %v2981_v9 }
  0x3f   :  { %1750 = vmatpush.bf16.msra.mxu2 %v2824_v46  ;;  %v3021_v46 = vld [vmem:[#allocation2 + $0x35c] sm:$0xf0]  ;;  %v3344_v58 = vor.u32 %v3959_v49, %v3341_v50  ;;  %v3949_v12 = vld [vmem:[#allocation2 + $0x57c] sm:$0xf]  ;;  %v3144_v16 = vor.u32 %v3909_v10, %v3141_v11  ;;  %v2961_v22 = vld [vmem:[#allocation2 + $0x2e4] sm:$0xf0] }
  0x40   :  { %1738 = vmatpush.bf16.msrb.mxu3 %v2644_v51  ;;  %v3524_v51 = vor.u32 %v4004_v41, %v3521_v42  ;;  %v3024_v52 = vor.u32 %v3879_v43, %v3021_v46  ;;  %v3989_v17 = vld [vmem:[#allocation2 + $0x6bc] sm:$0xf]  ;;  %v3904_v23 = vld [vmem:[#allocation2 + $0x414] sm:$0xf]  ;;  %v3281_v26 = vld [vmem:[#allocation2 + $0x564] sm:$0xf0] }
  0x41   :  { %1700 = vmatpush.bf16.msrb.mxu0 %v3260_v61  ;;  %v3914_v61 = vld [vmem:[#allocation2 + $0x464] sm:$0xf]  ;;  %v3984_v31 = vld [vmem:[#allocation2 + $0x694] sm:$0xf]  ;;  %v3441_v32 = vld [vmem:[#allocation2 + $0x6a4] sm:$0xf0] }
  0x42   :  { %1713 = vmatpush.bf16.msrb.mxu1 %v3420_v1  ;;  %v3504_v1 = vor.u32 %v3999_v55, %v3501_v56  ;;  %v3164_v3 = vor.u32 %v3914_v61, %v3161_v62  ;;  %v3859_v33 = vld [vmem:[#allocation2 + $0x2ac] sm:$0xf]  ;;  %v2941_v36 = vld [vmem:[#allocation2 + $0x2bc] sm:$0xf0]  ;;  %v3444_v41 = vor.u32 %v3984_v31, %v3441_v32  ;;  %v2921_v48 = vld [vmem:[#allocation2 + $0x294] sm:$0xf0] }
  0x43   :  { %1751 = vmatpush.bf16.msra.mxu2 %v2804_v59  ;;  %v3001_v59 = vld [vmem:[#allocation2 + $0x334] sm:$0xf0]  ;;  %v3899_v37 = vld [vmem:[#allocation2 + $0x3ec] sm:$0xf]  ;;  %v3421_v43 = vld [vmem:[#allocation2 + $0x67c] sm:$0xf0]  ;;  %v2944_v46 = vor.u32 %v3859_v33, %v2941_v36 }
  0x44   :  { %1739 = vmatpush.bf16.msrb.mxu3 %v2624_v2  ;;  %v3004_v2 = vor.u32 %v3874_v57, %v3001_v59  ;;  %v3979_v42 = vld [vmem:[#allocation2 + $0x66c] sm:$0xf]  ;;  %v3894_v49 = vld [vmem:[#allocation2 + $0x3c4] sm:$0xf]  ;;  %v3081_v50 = vld [vmem:[#allocation2 + $0x3d4] sm:$0xf0] }
  0x45   :  { %1701 = vmatpush.bf16.msrb.mxu0 %v3240_v14  ;;  %v3484_v14 = vor.u32 %v3994_v4, %v3481_v6  ;;  %v2747_v55 = vld [vmem:[#allocation2 + $0x120] sm:$0xf]  ;;  %v3812_v56 = vld [vmem:[#allocation2 + $0x130] sm:$0xf0]  ;;  %v4014_v61 = vld [vmem:[#allocation2 + $0x784] sm:$0xf]  ;;  %v3084_v0 = vor.u32 %v3894_v49, %v3081_v50 }
  0x46   :  { %1714 = vmatpush.bf16.msrb.mxu1 %v3400_v18  ;;  %v3461_v18 = vld [vmem:[#allocation2 + $0x6cc] sm:$0xf0]  ;;  %v3067_v57 = vld [vmem:[#allocation2 + $0x3a0] sm:$0xf]  ;;  %v3892_v59 = vld [vmem:[#allocation2 + $0x3b0] sm:$0xf0]  ;;  %v2748_v4 = vor.u32 %v3812_v56, %v2747_v55 }
  0x47   :  { %1752 = vmatpush.bf16.msra.mxu2 %v2784_v13  ;;  %v3301_v13 = vld [vmem:[#allocation2 + $0x58c] sm:$0xf0]  ;;  %v3464_v27 = vor.u32 %v3989_v17, %v3461_v18  ;;  %v3561_v62 = vld [vmem:[#allocation2 + $0x794] sm:$0xf0]  ;;  %v2907_v6 = vld [vmem:[#allocation2 + $0x260] sm:$0xf]  ;;  %v3068_v7 = vor.u32 %v3892_v59, %v3067_v57 }
  0x48   :  { %1740 = vmatpush.bf16.msrb.mxu3 %v2604_v20  ;;  %1702 = vmatmul.bf16.vlgmr.msrb.gmra.mxu0 %v4209_v30  ;;  %v3864_v20 = vld [vmem:[#allocation2 + $0x2d4] sm:$0xf]  ;;  %v3304_v21 = vor.u32 %v3949_v12, %v3301_v13  ;;  %v2727_v10 = vld [vmem:[#allocation2 + $0xf8] sm:$0xf]  ;;  %v3807_v11 = vld [vmem:[#allocation2 + $0x108] sm:$0xf0] }
  0x49   :  { %1759 = vmatpush.bf16.msra.mxu0 %v3064_v24  ;;  %1715 = vmatmul.bf16.vlgmr.msrb.gmra.mxu1 %v4211_v35  ;;  %v3121_v24 = vld [vmem:[#allocation2 + $0x424] sm:$0xf0]  ;;  %v2964_v28 = vor.u32 %v3864_v20, %v2961_v22  ;;  %v3852_v9 = vld [vmem:[#allocation2 + $0x270] sm:$0xf0]  ;;  %v3047_v13 = vld [vmem:[#allocation2 + $0x378] sm:$0xf]  ;;  %v2728_v18 = vor.u32 %v3807_v11, %v2727_v10 }
  0x4a   :  { %1772 = vmatpush.bf16.msra.mxu1 %v3224_v25  ;;  %v3944_v25 = vld [vmem:[#allocation2 + $0x554] sm:$0xf]  ;;  %v2908_v17 = vor.u32 %v3852_v9, %v2907_v6  ;;  %v2887_v20 = vld [vmem:[#allocation2 + $0x238] sm:$0xf]  ;;  %v3847_v22 = vld [vmem:[#allocation2 + $0x248] sm:$0xf0] }
  0x4b   :  { %1753 = vmatpush.bf16.msra.mxu2 %v2764_v34  ;;  %1741 = vmatmul.bf16.vlgmr.msrb.gmra.mxu3 %v4180_v60  ;;  %v3284_v34 = vor.u32 %v3944_v25, %v3281_v26  ;;  %v3027_v26 = vld [vmem:[#allocation2 + $0x350] sm:$0xf]  ;;  %v2888_v31 = vor.u32 %v3847_v22, %v2887_v20  ;;  %v3842_v36 = vld [vmem:[#allocation2 + $0x220] sm:$0xf0]  ;;  %v3837_v49 = vld [vmem:[#allocation2 + $0x1f8] sm:$0xf0] }
  0x4c   :  { %1785 = vmatpush.bf16.msra.mxu3 %v3384_v29  ;;  %v3124_v29 = vor.u32 %v3904_v23, %v3121_v24  ;;  %v2707_v23 = vld [vmem:[#allocation2 + $0xd0] sm:$0xf]  ;;  %v3802_v24 = vld [vmem:[#allocation2 + $0xe0] sm:$0xf0]  ;;  %v2667_v50 = vld [vmem:[#allocation2 + $0x80] sm:$0xf] }
  0x4d   :  { %1760 = vmatpush.bf16.msra.mxu0 %v3044_v39  ;;  %v3939_v39 = vld [vmem:[#allocation2 + $0x52c] sm:$0xf]  ;;  %v2708_v32 = vor.u32 %v3802_v24, %v2707_v23  ;;  %v2867_v33 = vld [vmem:[#allocation2 + $0x210] sm:$0xf]  ;;  %v3872_v55 = vld [vmem:[#allocation2 + $0x310] sm:$0xf0] }
  0x4e   :  { %1773 = vmatpush.bf16.msra.mxu1 %v3204_v40  ;;  %1754 = vmatmul.bf16.vlgmr.msra.gmra.mxu2 %v4187_v5  ;;  %v3261_v40 = vld [vmem:[#allocation2 + $0x53c] sm:$0xf0]  ;;  %v3167_v56 = vld [vmem:[#allocation2 + $0x468] sm:$0xf]  ;;  %v3917_v57 = vld [vmem:[#allocation2 + $0x478] sm:$0xf0] }
  0x4f   :  { %1798 = vmatpush.bf16.msrb.mxu2 %v3544_v38  ;;  %v3101_v38 = vld [vmem:[#allocation2 + $0x3fc] sm:$0xf0]  ;;  %v2807_v10 = vld [vmem:[#allocation2 + $0x198] sm:$0xf]  ;;  %v3907_v20 = vld [vmem:[#allocation2 + $0x428] sm:$0xf0] }
  0x50   :  { %1786 = vmatpush.bf16.msra.mxu3 %v3364_v44  ;;  %v3854_v44 = vld [vmem:[#allocation2 + $0x284] sm:$0xf]  ;;  %v3104_v47 = vor.u32 %v3899_v37, %v3101_v38  ;;  %v2687_v37 = vld [vmem:[#allocation2 + $0xa8] sm:$0xf]  ;;  %v3797_v38 = vld [vmem:[#allocation2 + $0xb8] sm:$0xf0] }
  0x51   :  { %1761 = vmatpush.bf16.msra.mxu0 %v3024_v52  ;;  %v3934_v52 = vld [vmem:[#allocation2 + $0x504] sm:$0xf]  ;;  %v2924_v63 = vor.u32 %v3854_v44, %v2921_v48  ;;  %v2868_v44 = vor.u32 %v3842_v36, %v2867_v33  ;;  %v3147_v6 = vld [vmem:[#allocation2 + $0x440] sm:$0xf]  ;;  %v2787_v23 = vld [vmem:[#allocation2 + $0x170] sm:$0xf] }
  0x52   :  { %1774 = vmatpush.bf16.msra.mxu1 %v3184_v54  ;;  %v3241_v54 = vld [vmem:[#allocation2 + $0x514] sm:$0xf0]  ;;  %v3822_v24 = vld [vmem:[#allocation2 + $0x180] sm:$0xf0]  ;;  %v3972_v33 = vld [vmem:[#allocation2 + $0x630] sm:$0xf0] }
  0x53   :  { %1799 = vmatpush.bf16.msrb.mxu2 %v3524_v51  ;;  %v3264_v51 = vor.u32 %v3939_v39, %v3261_v40  ;;  %v3007_v40 = vld [vmem:[#allocation2 + $0x328] sm:$0xf]  ;;  %v3902_v36 = vld [vmem:[#allocation2 + $0x400] sm:$0xf0] }
  0x54   :  { %1787 = vmatpush.bf16.msra.mxu3 %v3344_v58  ;;  %v3424_v58 = vor.u32 %v3979_v42, %v3421_v43  ;;  %v3187_v42 = vld [vmem:[#allocation2 + $0x490] sm:$0xf]  ;;  %v3922_v43 = vld [vmem:[#allocation2 + $0x4a0] sm:$0xf0] }
  0x55   :  { %1762 = vmatpush.bf16.msra.mxu0 %v3004_v2  ;;  %v3401_v2 = vld [vmem:[#allocation2 + $0x654] sm:$0xf0] }
  0x56   :  { %1775 = vmatpush.bf16.msra.mxu1 %v3164_v3  ;;  %v3244_v3 = vor.u32 %v3934_v52, %v3241_v54  ;;  %v3188_v52 = vor.u32 %v3922_v43, %v3187_v42  ;;  %v2987_v54 = vld [vmem:[#allocation2 + $0x300] sm:$0xf] }
  0x57   :  { %1800 = vmatpush.bf16.msrb.mxu2 %v3504_v1  ;;  %v3974_v1 = vld [vmem:[#allocation2 + $0x644] sm:$0xf] }
  0x58   :  { %1788 = vmatpush.bf16.msra.mxu3 %v3324_v8  ;;  %v3564_v8 = vor.u32 %v4014_v61, %v3561_v62  ;;  %v3404_v12 = vor.u32 %v3974_v1, %v3401_v2  ;;  %v2827_v61 = vld [vmem:[#allocation2 + $0x1c0] sm:$0xf]  ;;  %v2988_v62 = vor.u32 %v3872_v55, %v2987_v54  ;;  %v3787_v1 = vld [vmem:[#allocation2 + $0x68] sm:$0xf0]  ;;  %v3168_v2 = vor.u32 %v3917_v57, %v3167_v56  ;;  %v3087_v55 = vld [vmem:[#allocation2 + $0x3c8] sm:$0xf] }
  0x59   :  { %1763 = vmatpush.bf16.msra.mxu0 %v2984_v15  ;;  %v3227_v15 = vld [vmem:[#allocation2 + $0x4e0] sm:$0xf]  ;;  %v3967_v54 = vld [vmem:[#allocation2 + $0x608] sm:$0xf0]  ;;  %v3897_v56 = vld [vmem:[#allocation2 + $0x3d8] sm:$0xf0] }
  0x5a   :  { %1776 = vmatpush.bf16.msra.mxu1 %v3144_v16  ;;  %v3932_v16 = vld [vmem:[#allocation2 + $0x4f0] sm:$0xf0] }
  0x5b   :  { %1801 = vmatpush.bf16.msrb.mxu2 %v3484_v14  ;;  %v3887_v14 = vld [vmem:[#allocation2 + $0x388] sm:$0xf0]  ;;  %v3228_v25 = vor.u32 %v3932_v16, %v3227_v15  ;;  %v2947_v16 = vld [vmem:[#allocation2 + $0x2b0] sm:$0xf] }
  0x5c   :  { %1789 = vmatpush.bf16.msra.mxu3 %v3304_v21  ;;  %v3048_v21 = vor.u32 %v3887_v14, %v3047_v13  ;;  %v2627_v13 = vld [vmem:[#allocation2 + $0x30] sm:$0xf]  ;;  %v3782_v14 = vld [vmem:[#allocation2 + $0x40] sm:$0xf0] }
  0x5d   :  { %1764 = vmatpush.bf16.msra.mxu0 %v2964_v28  ;;  %v3207_v28 = vld [vmem:[#allocation2 + $0x4b8] sm:$0xf]  ;;  %v2628_v22 = vor.u32 %v3782_v14, %v2627_v13  ;;  %v3507_v13 = vld [vmem:[#allocation2 + $0x710] sm:$0xf] }
  0x5e   :  { %1777 = vmatpush.bf16.msra.mxu1 %v3124_v29  ;;  %v3927_v29 = vld [vmem:[#allocation2 + $0x4c8] sm:$0xf0] }
  0x5f   :  { %1802 = vmatpush.bf16.msrb.mxu2 %v3464_v27  ;;  %v3882_v27 = vld [vmem:[#allocation2 + $0x360] sm:$0xf0]  ;;  %v3208_v39 = vor.u32 %v3927_v29, %v3207_v28  ;;  %v2927_v28 = vld [vmem:[#allocation2 + $0x288] sm:$0xf]  ;;  %v3857_v29 = vld [vmem:[#allocation2 + $0x298] sm:$0xf0] }
  0x60   :  { %1790 = vmatpush.bf16.msra.mxu3 %v3284_v34  ;;  %v3028_v34 = vor.u32 %v3882_v27, %v3027_v26  ;;  %v3777_v27 = vld [vmem:[#allocation2 + $0x18] sm:$0xf0]  ;;  %v2928_v42 = vor.u32 %v3857_v29, %v2927_v28  ;;  %v3835_v29 = vld [vmem:[#allocation2 + $0x1ec] sm:$0xf] }
  0x61   :  { %1765 = vmatpush.bf16.msra.mxu0 %v2944_v46  ;;  %v2688_v46 = vor.u32 %v3797_v38, %v2687_v37  ;;  %v3567_v37 = vld [vmem:[#allocation2 + $0x788] sm:$0xf]  ;;  %v4017_v38 = vld [vmem:[#allocation2 + $0x798] sm:$0xf0] }
  0x62   :  { %1778 = vmatpush.bf16.msra.mxu1 %v3104_v47  ;;  %v2847_v47 = vld [vmem:[#allocation2 + $0x1e8] sm:$0xf]  ;;  %v3997_v28 = vld [vmem:[#allocation2 + $0x6f8] sm:$0xf0] }
  0x63   :  { %1803 = vmatpush.bf16.msrb.mxu2 %v3444_v41  ;;  %v3877_v41 = vld [vmem:[#allocation2 + $0x338] sm:$0xf0] }
  0x64   :  { %1791 = vmatpush.bf16.msra.mxu3 %v3264_v51  ;;  %v3008_v48 = vor.u32 %v3877_v41, %v3007_v40  ;;  %v3792_v51 = vld [vmem:[#allocation2 + $0x90] sm:$0xf0]  ;;  %v2767_v41 = vld [vmem:[#allocation2 + $0x148] sm:$0xf] }
  0x65   :  { %1766 = vmatpush.bf16.msra.mxu0 %v2924_v63  ;;  %v2668_v59 = vor.u32 %v3792_v51, %v2667_v50  ;;  %v3832_v63 = vld [vmem:[#allocation2 + $0x1d0] sm:$0xf0]  ;;  %v3850_v50 = vld [vmem:[#allocation2 + $0x264] sm:$0xf]  ;;  %v2909_v51 = vld [vmem:[#allocation2 + $0x274] sm:$0xf0] }
  0x66   :  { %1779 = vmatpush.bf16.msra.mxu1 %v3084_v0  ;;  %v2647_v0 = vld [vmem:[#allocation2 + $0x58] sm:$0xf] }
  0x67   :  { %1804 = vmatpush.bf16.msrb.mxu2 %v3424_v58  ;;  %v2848_v58 = vor.u32 %v3837_v49, %v2847_v47  ;;  %v2648_v9 = vor.u32 %v3787_v1, %v2647_v0  ;;  %v4012_v47 = vld [vmem:[#allocation2 + $0x770] sm:$0xf0]  ;;  %v3568_v49 = vor.u32 %v4017_v38, %v3567_v37  ;;  %v3088_v1 = vor.u32 %v3897_v56, %v3087_v55  ;;  %v2689_v37 = vld [vmem:[#allocation2 + $0xbc] sm:$0xf0]  ;;  %v3987_v56 = vld [vmem:[#allocation2 + $0x6a8] sm:$0xf0] }
  0x68   :  { %1792 = vmatpush.bf16.msra.mxu3 %v3244_v3  ;;  %1767 = vmatmul.bf16.vlgmr.msra.gmra.mxu0 %v4175_v53  ;;  %v2967_v3 = vld [vmem:[#allocation2 + $0x2d8] sm:$0xf] }
  0x69   :  { %1850 = vmatpush.bf16.msrb.mxu0 %v3068_v7  ;;  %1780 = vmatmul.bf16.vlgmr.msra.gmra.mxu1 %v4193_v19  ;;  %v3912_v7 = vld [vmem:[#allocation2 + $0x450] sm:$0xf0] }
  0x6a   :  { %1824 = vmatpush.bf16.msrb.mxu1 %v2748_v4  ;;  %v3867_v4 = vld [vmem:[#allocation2 + $0x2e8] sm:$0xf0]  ;;  %v3148_v15 = vor.u32 %v3912_v7, %v3147_v6  ;;  %v3347_v7 = vld [vmem:[#allocation2 + $0x5d0] sm:$0xf] }
  0x6b   :  { %1805 = vmatpush.bf16.msrb.mxu2 %v3404_v12  ;;  %1793 = vmatmul.bf16.vlgmr.msra.gmra.mxu3 %v4209_v30  ;;  %v2968_v11 = vor.u32 %v3867_v4, %v2967_v3  ;;  %v3827_v12 = vld [vmem:[#allocation2 + $0x1a8] sm:$0xf0]  ;;  %v3845_v3 = vld [vmem:[#allocation2 + $0x23c] sm:$0xf]  ;;  %v2889_v4 = vld [vmem:[#allocation2 + $0x24c] sm:$0xf0] }
  0x6c   :  { %1818 = vmatpush.bf16.msrb.mxu3 %v3564_v8  ;;  %v2828_v8 = vor.u32 %v3832_v63, %v2827_v61  ;;  %v3527_v63 = vld [vmem:[#allocation2 + $0x738] sm:$0xf] }
  0x6d   :  { %1851 = vmatpush.bf16.msrb.mxu0 %v3048_v21  ;;  %v2808_v21 = vor.u32 %v3827_v12, %v2807_v10  ;;  %v2729_v10 = vld [vmem:[#allocation2 + $0x10c] sm:$0xf0]  ;;  %v2892_v12 = vor.u32 %v3845_v3, %v2889_v4 }
  0x6e   :  { %1825 = vmatpush.bf16.msrb.mxu1 %v2728_v18  ;;  %1806 = vmatmul.bf16.vlgmr.msrb.gmra.mxu2 %v4211_v35  ;;  %v3127_v18 = vld [vmem:[#allocation2 + $0x418] sm:$0xf]  ;;  %v3427_v3 = vld [vmem:[#allocation2 + $0x670] sm:$0xf] }
  0x6f   :  { %1863 = vmatpush.bf16.msra.mxu2 %v3228_v25  ;;  %v2607_v25 = vld [vmem:[#allocation2 + $0x8] sm:$0xf] }
  0x70   :  { %1837 = vmatpush.bf16.msra.mxu3 %v2908_v17  ;;  %v3862_v17 = vld [vmem:[#allocation2 + $0x2c0] sm:$0xf0]  ;;  %v2608_v40 = vor.u32 %v3777_v27, %v2607_v25 }
  0x71   :  { %1852 = vmatpush.bf16.msrb.mxu0 %v3028_v34  ;;  %v2948_v26 = vor.u32 %v3862_v17, %v2947_v16  ;;  %v3107_v34 = vld [vmem:[#allocation2 + $0x3f0] sm:$0xf]  ;;  %v3840_v16 = vld [vmem:[#allocation2 + $0x214] sm:$0xf]  ;;  %v2869_v17 = vld [vmem:[#allocation2 + $0x224] sm:$0xf0] }
  0x72   :  { %1826 = vmatpush.bf16.msrb.mxu1 %v2708_v32  ;;  %v3387_v32 = vld [vmem:[#allocation2 + $0x620] sm:$0xf]  ;;  %v2872_v25 = vor.u32 %v3840_v16, %v2869_v17 }
  0x73   :  { %1864 = vmatpush.bf16.msra.mxu2 %v3208_v39  ;;  %v2788_v39 = vor.u32 %v3822_v24, %v2787_v23  ;;  %v3388_v43 = vor.u32 %v3972_v33, %v3387_v32  ;;  %v2709_v23 = vld [vmem:[#allocation2 + $0xe4] sm:$0xf0]  ;;  %v3307_v33 = vld [vmem:[#allocation2 + $0x580] sm:$0xf] }
  0x74   :  { %1838 = vmatpush.bf16.msra.mxu3 %v2888_v31  ;;  %v3128_v31 = vor.u32 %v3907_v20, %v3127_v18  ;;  %v3327_v20 = vld [vmem:[#allocation2 + $0x5a8] sm:$0xf] }
  0x75   :  { %1853 = vmatpush.bf16.msrb.mxu0 %v3008_v48  ;;  %v3108_v48 = vor.u32 %v3902_v36, %v3107_v34  ;;  %v3952_v34 = vld [vmem:[#allocation2 + $0x590] sm:$0xf0]  ;;  %v3795_v36 = vld [vmem:[#allocation2 + $0xac] sm:$0xf] }
  0x76   :  { %1827 = vmatpush.bf16.msrb.mxu1 %v2688_v46  ;;  %v3547_v46 = vld [vmem:[#allocation2 + $0x760] sm:$0xf] }
  0x77   :  { %1865 = vmatpush.bf16.msra.mxu2 %v3188_v52  ;;  %v3367_v52 = vld [vmem:[#allocation2 + $0x5f8] sm:$0xf]  ;;  %v3548_v61 = vor.u32 %v4012_v47, %v3547_v46  ;;  %v2692_v46 = vor.u32 %v3795_v36, %v2689_v37 }
  0x78   :  { %1839 = vmatpush.bf16.msra.mxu3 %v2868_v44  ;;  %v3817_v44 = vld [vmem:[#allocation2 + $0x158] sm:$0xf0]  ;;  %v3368_v0 = vor.u32 %v3967_v54, %v3367_v52  ;;  %v3287_v47 = vld [vmem:[#allocation2 + $0x558] sm:$0xf] }
  0x79   :  { %1854 = vmatpush.bf16.msrb.mxu0 %v2988_v62  ;;  %v2768_v57 = vor.u32 %v3817_v44, %v2767_v41  ;;  %v2912_v62 = vor.u32 %v3850_v50, %v2909_v51  ;;  %v3308_v41 = vor.u32 %v3952_v34, %v3307_v33  ;;  %v2829_v44 = vld [vmem:[#allocation2 + $0x1d4] sm:$0xf0]  ;;  %v3775_v33 = vld [vmem:[#allocation2 + $0xc] sm:$0xf]  ;;  %v2609_v34 = vld [vmem:[#allocation2 + $0x1c] sm:$0xf0] }
  0x7a   :  { %1828 = vmatpush.bf16.msrb.mxu1 %v2668_v59  ;;  %v2749_v59 = vld [vmem:[#allocation2 + $0x134] sm:$0xf0] }
  0x7b   :  { %1866 = vmatpush.bf16.msra.mxu2 %v3168_v2  ;;  %3578 = vmatmul.msk.bf16.vlgmr.msrb.gmra.mxu3 %vm1638_vm0, %v4199_v45  ;;  %v4007_v2 = vld [vmem:[#allocation2 + $0x748] sm:$0xf0]  ;;  %v2669_v50 = vld [vmem:[#allocation2 + $0x94] sm:$0xf0] }
  0x7c   :  { %1840 = vmatpush.bf16.msra.mxu3 %v2848_v58  ;;  %v3810_v58 = vld [vmem:[#allocation2 + $0x124] sm:$0xf]  ;;  %v3447_v54 = vld [vmem:[#allocation2 + $0x698] sm:$0xf] }
  0x7d   :  { %1855 = vmatpush.bf16.msrb.mxu0 %v2968_v11  ;;  %v2752_v6 = vor.u32 %v3810_v58, %v2749_v59  ;;  %v3528_v11 = vor.u32 %v4007_v2, %v3527_v63  ;;  %v2809_v58 = vld [vmem:[#allocation2 + $0x1ac] sm:$0xf0]  ;;  %v3785_v63 = vld [vmem:[#allocation2 + $0x5c] sm:$0xf] }
  0x7e   :  { %1829 = vmatpush.bf16.msrb.mxu1 %v2648_v9  ;;  %v3805_v9 = vld [vmem:[#allocation2 + $0xfc] sm:$0xf] }
  0x7f   :  { %1867 = vmatpush.bf16.msra.mxu2 %v3148_v15  ;;  %v4002_v15 = vld [vmem:[#allocation2 + $0x720] sm:$0xf0]  ;;  %v2732_v18 = vor.u32 %v3805_v9, %v2729_v10  ;;  %v3247_v10 = vld [vmem:[#allocation2 + $0x508] sm:$0xf] }
  0x80   :  { %1841 = vmatpush.bf16.msra.mxu3 %v2828_v8  ;;  %v3962_v8 = vld [vmem:[#allocation2 + $0x5e0] sm:$0xf0]  ;;  %v3508_v24 = vor.u32 %v4002_v15, %v3507_v13  ;;  %v3069_v13 = vld [vmem:[#allocation2 + $0x3b4] sm:$0xf0]  ;;  %v2629_v15 = vld [vmem:[#allocation2 + $0x44] sm:$0xf0] }
  0x81   :  { %1856 = vmatpush.bf16.msrb.mxu0 %v2948_v26  ;;  %v3348_v14 = vor.u32 %v3962_v8, %v3347_v7  ;;  %v3487_v26 = vld [vmem:[#allocation2 + $0x6e8] sm:$0xf]  ;;  %v3820_v7 = vld [vmem:[#allocation2 + $0x174] sm:$0xf] }
  0x82   :  { %1830 = vmatpush.bf16.msrb.mxu1 %v2628_v22  ;;  %v3800_v22 = vld [vmem:[#allocation2 + $0xd4] sm:$0xf]  ;;  %v3488_v38 = vor.u32 %v3997_v28, %v3487_v26  ;;  %v2789_v8 = vld [vmem:[#allocation2 + $0x184] sm:$0xf0]  ;;  %v4010_v28 = vld [vmem:[#allocation2 + $0x764] sm:$0xf] }
  0x83   :  { %1868 = vmatpush.bf16.msra.mxu2 %v3128_v31  ;;  %v2849_v31 = vld [vmem:[#allocation2 + $0x1fc] sm:$0xf0]  ;;  %v2712_v32 = vor.u32 %v3800_v22, %v2709_v23  ;;  %v2792_v17 = vor.u32 %v3820_v7, %v2789_v8 }
  0x84   :  { %1842 = vmatpush.bf16.msra.mxu3 %v2808_v21  ;;  %v3957_v21 = vld [vmem:[#allocation2 + $0x5b8] sm:$0xf0]  ;;  %v2769_v23 = vld [vmem:[#allocation2 + $0x15c] sm:$0xf0] }
  0x85   :  { %1857 = vmatpush.bf16.msrb.mxu0 %v2928_v42  ;;  %v3328_v27 = vor.u32 %v3957_v21, %v3327_v20  ;;  %v3992_v42 = vld [vmem:[#allocation2 + $0x6d0] sm:$0xf0]  ;;  %v3977_v20 = vld [vmem:[#allocation2 + $0x658] sm:$0xf0]  ;;  %v3815_v21 = vld [vmem:[#allocation2 + $0x14c] sm:$0xf] }
  0x86   :  { %1831 = vmatpush.bf16.msrb.mxu1 %v2608_v40  ;;  %v3467_v40 = vld [vmem:[#allocation2 + $0x6c0] sm:$0xf]  ;;  %v2772_v37 = vor.u32 %v3815_v21, %v2769_v23 }
  0x87   :  { %1869 = vmatpush.bf16.msra.mxu2 %v3108_v48  ;;  %v3947_v48 = vld [vmem:[#allocation2 + $0x568] sm:$0xf0]  ;;  %v3468_v51 = vor.u32 %v3992_v42, %v3467_v40  ;;  %v3925_v42 = vld [vmem:[#allocation2 + $0x4bc] sm:$0xf] }
  0x88   :  { %1843 = vmatpush.bf16.msra.mxu3 %v2788_v39  ;;  %1858 = vmatmul.bf16.vlgmr.msrb.gmra.mxu0 %v4175_v53  ;;  %v2852_v39 = vor.u32 %v3835_v29, %v2849_v31  ;;  %v3288_v55 = vor.u32 %v3947_v48, %v3287_v47  ;;  %v3549_v29 = vld [vmem:[#allocation2 + $0x774] sm:$0xf0]  ;;  %v3885_v31 = vld [vmem:[#allocation2 + $0x37c] sm:$0xf]  ;;  %v3529_v48 = vld [vmem:[#allocation2 + $0x74c] sm:$0xf0] }
  0x89   :  { %1909 = vmatpush.bf16.msra.mxu0 %v3568_v49  ;;  %1832 = vmatmul.bf16.vlgmr.msrb.gmra.mxu1 %v4180_v60  ;;  %v3790_v49 = vld [vmem:[#allocation2 + $0x84] sm:$0xf]  ;;  %v4005_v47 = vld [vmem:[#allocation2 + $0x73c] sm:$0xf] }
  0x8a   :  { %1876 = vmatpush.bf16.msra.mxu1 %v3388_v43  ;;  %v3830_v43 = vld [vmem:[#allocation2 + $0x1c4] sm:$0xf]  ;;  %v2672_v59 = vor.u32 %v3790_v49, %v2669_v50  ;;  %v3880_v50 = vld [vmem:[#allocation2 + $0x354] sm:$0xf] }
  0x8b   :  { %1870 = vmatpush.bf16.msra.mxu2 %v3088_v1  ;;  %v2832_v52 = vor.u32 %v3830_v43, %v2829_v44  ;;  %v3448_v1 = vor.u32 %v3987_v56, %v3447_v54  ;;  %v2612_v44 = vor.u32 %v3775_v33, %v2609_v34  ;;  %v3369_v54 = vld [vmem:[#allocation2 + $0x60c] sm:$0xf0]  ;;  %v3532_v56 = vor.u32 %v4005_v47, %v3529_v48  ;;  %v3950_v34 = vld [vmem:[#allocation2 + $0x584] sm:$0xf]  ;;  %v3860_v48 = vld [vmem:[#allocation2 + $0x2b4] sm:$0xf] }
  0x8c   :  { %1844 = vmatpush.bf16.msra.mxu3 %v2768_v57  ;;  %v3825_v57 = vld [vmem:[#allocation2 + $0x19c] sm:$0xf] }
  0x8d   :  { %1928 = vmatpush.bf16.msrb.mxu0 %v2912_v62  ;;  %v3942_v62 = vld [vmem:[#allocation2 + $0x540] sm:$0xf0]  ;;  %v2812_v2 = vor.u32 %v3825_v57, %v2809_v58  ;;  %v3920_v57 = vld [vmem:[#allocation2 + $0x494] sm:$0xf] }
  0x8e   :  { %1877 = vmatpush.bf16.msra.mxu1 %v3368_v0  ;;  %1871 = vmatmul.bf16.vlgmr.msra.gmra.mxu2 %v4193_v19  ;;  %v2649_v0 = vld [vmem:[#allocation2 + $0x6c] sm:$0xf0]  ;;  %v4232_v58 = vld [vmem:[%s4436_s2] sm:$0x1f] }
  0x8f   :  { %1915 = vmatpush.bf16.msrb.mxu2 %v2752_v6  ;;  %1845 = vmatmul.bf16.vlgmr.msra.gmra.mxu3 %v4187_v5  ;;  %v3982_v6 = vld [vmem:[#allocation2 + $0x680] sm:$0xf0]  ;;  %v2652_v9 = vor.u32 %v3785_v63, %v2649_v0  ;;  %v3509_v63 = vld [vmem:[#allocation2 + $0x724] sm:$0xf0] }
  0x90   :  { %1889 = vmatpush.bf16.msrb.mxu3 %v3548_v61  ;;  %v3267_v61 = vld [vmem:[#allocation2 + $0x530] sm:$0xf]  ;;  %v3428_v16 = vor.u32 %v3982_v6, %v3427_v3  ;;  %v3960_v3 = vld [vmem:[#allocation2 + $0x5d4] sm:$0xf]  ;;  %v354_v6 = vperm.slane %v4232_v58, 0 }
  0x91   :  { %1929 = vmatpush.bf16.msrb.mxu0 %v2892_v12  ;;  %v3268_v4 = vor.u32 %v3942_v62, %v3267_v61  ;;  %v3890_v12 = vld [vmem:[#allocation2 + $0x3a4] sm:$0xf]  ;;  %v3189_v61 = vld [vmem:[#allocation2 + $0x4a4] sm:$0xf0]  ;;  %v4000_v62 = vld [vmem:[#allocation2 + $0x714] sm:$0xf] }
  0x92   :  { %1878 = vmatpush.bf16.msra.mxu1 %v3348_v14  ;;  %v3780_v14 = vld [vmem:[#allocation2 + $0x34] sm:$0xf]  ;;  %v3072_v26 = vor.u32 %v3890_v12, %v3069_v13  ;;  %v3192_v7 = vor.u32 %v3920_v57, %v3189_v61  ;;  %v3512_v8 = vor.u32 %v4000_v62, %v3509_v63  ;;  %v3995_v12 = vld [vmem:[#allocation2 + $0x6ec] sm:$0xf]  ;;  %v3489_v13 = vld [vmem:[#allocation2 + $0x6fc] sm:$0xf0] }
  0x93   :  { %1916 = vmatpush.bf16.msrb.mxu2 %v2732_v18  ;;  %v3407_v18 = vld [vmem:[#allocation2 + $0x648] sm:$0xf]  ;;  %v3492_v23 = vor.u32 %v3995_v12, %v3489_v13  ;;  %v3980_v61 = vld [vmem:[#allocation2 + $0x674] sm:$0xf]  ;;  %v3089_v13 = vld [vmem:[#allocation2 + $0x3dc] sm:$0xf0] }
  0x94   :  { %1890 = vmatpush.bf16.msrb.mxu3 %v3528_v11  ;;  %v3937_v11 = vld [vmem:[#allocation2 + $0x518] sm:$0xf0]  ;;  %v3408_v36 = vor.u32 %v3977_v20, %v3407_v18  ;;  %v3955_v18 = vld [vmem:[#allocation2 + $0x5ac] sm:$0xf]  ;;  %v3329_v20 = vld [vmem:[#allocation2 + $0x5bc] sm:$0xf0] }
  0x95   :  { %1930 = vmatpush.bf16.msrb.mxu0 %v2872_v25  ;;  %v3248_v22 = vor.u32 %v3937_v11, %v3247_v10  ;;  %v3229_v25 = vld [vmem:[#allocation2 + $0x4f4] sm:$0xf0]  ;;  %v3169_v11 = vld [vmem:[#allocation2 + $0x47c] sm:$0xf0]  ;;  %v3429_v62 = vld [vmem:[#allocation2 + $0x684] sm:$0xf0] }
  0x96   :  { %1879 = vmatpush.bf16.msra.mxu1 %v3328_v27  ;;  %v2632_v27 = vor.u32 %v3780_v14, %v2629_v15  ;;  %v3870_v15 = vld [vmem:[#allocation2 + $0x304] sm:$0xf] }
  0x97   :  { %1917 = vmatpush.bf16.msrb.mxu2 %v2712_v32  ;;  %v3049_v32 = vld [vmem:[#allocation2 + $0x38c] sm:$0xf0] }
  0x98   :  { %1891 = vmatpush.bf16.msrb.mxu3 %v3508_v24  ;;  %3579 = vmatmul.msk.bf16.vlgmr.msra.gmra.mxu0 %vm1638_vm0, %v4199_v45  ;;  %v3930_v24 = vld [vmem:[#allocation2 + $0x4e4] sm:$0xf]  ;;  %v3052_v43 = vor.u32 %v3885_v31, %v3049_v32  ;;  %v3865_v31 = vld [vmem:[#allocation2 + $0x2dc] sm:$0xf]  ;;  %v2969_v32 = vld [vmem:[#allocation2 + $0x2ec] sm:$0xf0] }
  0x99   :  { %1931 = vmatpush.bf16.msrb.mxu0 %v2852_v39  ;;  %v3389_v39 = vld [vmem:[#allocation2 + $0x634] sm:$0xf0]  ;;  %v3232_v40 = vor.u32 %v3930_v24, %v3229_v25  ;;  %v3910_v24 = vld [vmem:[#allocation2 + $0x444] sm:$0xf] }
  0x9a   :  { %1880 = vmatpush.bf16.msra.mxu1 %v3308_v41  ;;  %v3552_v41 = vor.u32 %v4010_v28, %v3549_v29  ;;  %v3469_v28 = vld [vmem:[#allocation2 + $0x6d4] sm:$0xf0]  ;;  %v3332_v29 = vor.u32 %v3955_v18, %v3329_v20  ;;  %v2755_v20 = vld [vmem:[#allocation2 + $0x128] sm:$0xf] }
  0x9b   :  { %1918 = vmatpush.bf16.msrb.mxu2 %v2692_v46  ;;  %v3209_v46 = vld [vmem:[#allocation2 + $0x4cc] sm:$0xf0] }
  0x9c   :  { %1892 = vmatpush.bf16.msrb.mxu3 %v3488_v38  ;;  %v3970_v38 = vld [vmem:[#allocation2 + $0x624] sm:$0xf] }
  0x9d   :  { %1932 = vmatpush.bf16.msrb.mxu0 %v2832_v52  ;;  %v3392_v49 = vor.u32 %v3970_v38, %v3389_v39  ;;  %v3965_v52 = vld [vmem:[#allocation2 + $0x5fc] sm:$0xf] }
  0x9e   :  { %1881 = vmatpush.bf16.msra.mxu1 %v3288_v55  ;;  %v3212_v55 = vor.u32 %v3925_v42, %v3209_v46  ;;  %v3372_v0 = vor.u32 %v3965_v52, %v3369_v54  ;;  %v3129_v42 = vld [vmem:[#allocation2 + $0x42c] sm:$0xf0] }
  0x9f   :  { %1919 = vmatpush.bf16.msrb.mxu2 %v2672_v59  ;;  %v3289_v52 = vld [vmem:[#allocation2 + $0x56c] sm:$0xf0] }
  0xa0   :  { %1893 = vmatpush.bf16.msrb.mxu3 %v3468_v51  ;;  %v3029_v51 = vld [vmem:[#allocation2 + $0x364] sm:$0xf0] }
  0xa1   :  { %1933 = vmatpush.bf16.msrb.mxu0 %v2812_v2  ;;  %v3032_v59 = vor.u32 %v3880_v50, %v3029_v51  ;;  %v3009_v2 = vld [vmem:[#allocation2 + $0x33c] sm:$0xf0]  ;;  %v3945_v51 = vld [vmem:[#allocation2 + $0x55c] sm:$0xf] }
  0xa2   :  { %1882 = vmatpush.bf16.msra.mxu1 %v3268_v4  ;;  %v3349_v4 = vld [vmem:[#allocation2 + $0x5e4] sm:$0xf0]  ;;  %v3292_v63 = vor.u32 %v3945_v51, %v3289_v52  ;;  %v3888_v51 = vld [vmem:[#allocation2 + $0x390] sm:$0xf0] }
  0xa3   :  { %1920 = vmatpush.bf16.msrb.mxu2 %v2652_v9  ;;  %v3915_v9 = vld [vmem:[#allocation2 + $0x46c] sm:$0xf]  ;;  %v3352_v14 = vor.u32 %v3960_v3, %v3349_v4  ;;  %v3269_v4 = vld [vmem:[#allocation2 + $0x544] sm:$0xf0] }
  0xa4   :  { %1894 = vmatpush.bf16.msrb.mxu3 %v3448_v1  ;;  %v3875_v1 = vld [vmem:[#allocation2 + $0x32c] sm:$0xf] }
  0xa5   :  { %1934 = vmatpush.bf16.msrb.mxu0 %v2792_v17  ;;  %v3012_v10 = vor.u32 %v3875_v1, %v3009_v2  ;;  %v1651_v17 = vpop.f32.mrf.mxu0  ;;  %v2929_v1 = vld [vmem:[#allocation2 + $0x29c] sm:$0xf0]  ;;  %v3940_v2 = vld [vmem:[#allocation2 + $0x534] sm:$0xf] }
  0xa6   :  { %1883 = vmatpush.bf16.msra.mxu1 %v3248_v22  ;;  %v1652_v21 = vadd.f32 %v1651_v17, %v354_v6  ;;  %v3172_v22 = vor.u32 %v3915_v9, %v3169_v11  ;;  %v1664_v33 = vpop.f32.mrf.mxu1  ;;  %v4015_v6 = vld [vmem:[#allocation2 + $0x78c] sm:$0xf]  ;;  %v3432_v9 = vor.u32 %v3980_v61, %v3429_v62  ;;  %v3272_v17 = vor.u32 %v3940_v2, %v3269_v4  ;;  %v3195_v62 = vld [vmem:[#allocation2 + $0x498] sm:$0xf] }
  0xa7   :  { %1921 = vmatpush.bf16.msrb.mxu2 %v2632_v27  ;;  %v3990_v27 = vld [vmem:[#allocation2 + $0x6c4] sm:$0xf]  ;;  %v3843_v61 = vld [vmem:[#allocation2 + $0x228] sm:$0xf0]  ;;  %v3035_v2 = vld [vmem:[#allocation2 + $0x358] sm:$0xf] }
  0xa8   :  { %1895 = vmatpush.bf16.msrb.mxu3 %v3428_v16  ;;  %v2989_v16 = vld [vmem:[#allocation2 + $0x314] sm:$0xf0]  ;;  %v3472_v39 = vor.u32 %v3990_v27, %v3469_v28  ;;  %v3935_v27 = vld [vmem:[#allocation2 + $0x50c] sm:$0xf]  ;;  %v3249_v28 = vld [vmem:[#allocation2 + $0x51c] sm:$0xf0] }
  0xa9   :  { %1935 = vmatpush.bf16.msrb.mxu0 %v2772_v37  ;;  %1884 = vmatmul.bf16.vlgmr.msra.gmra.mxu1 %v4209_v30  ;;  %v2992_v25 = vor.u32 %v3870_v15, %v2989_v16  ;;  %v4239_v37 = vadd.f32 %v1664_v33, %v1652_v21  ;;  %v3409_v15 = vld [vmem:[#allocation2 + $0x65c] sm:$0xf0]  ;;  %v3813_v21 = vld [vmem:[#allocation2 + $0x138] sm:$0xf0] }
  0xaa   :  { %1941 = vmatpush.bf16.msrb.mxu1 %v3072_v26  ;;  %v3149_v26 = vld [vmem:[#allocation2 + $0x454] sm:$0xf0]  ;;  %v3893_v33 = vld [vmem:[#allocation2 + $0x3b8] sm:$0xf0] }
  0xab   :  { %1922 = vmatpush.bf16.msrb.mxu2 %v2612_v44  ;;  %v3152_v38 = vor.u32 %v3910_v24, %v3149_v26  ;;  %v3449_v44 = vld [vmem:[#allocation2 + $0x6ac] sm:$0xf0]  ;;  %v3235_v24 = vld [vmem:[#allocation2 + $0x4e8] sm:$0xf] }
  0xac   :  { %1896 = vmatpush.bf16.msrb.mxu3 %v3408_v36  ;;  %1936 = vmatmul.bf16.vlgmr.msrb.gmra.mxu0 %v4187_v5  ;;  %v3309_v36 = vld [vmem:[#allocation2 + $0x594] sm:$0xf0] }
  0xad   :  { %1980 = vmatpush.bf16.msra.mxu0 %v3552_v41  ;;  %v2972_v41 = vor.u32 %v3865_v31, %v2969_v32  ;;  %v4241_v46 = vpop.f32.mrf.mxu2  ;;  %v3312_v47 = vor.u32 %v3950_v34, %v3309_v36  ;;  %v1653_v50 = vpop.f32.mrf.mxu0  ;;  %v2756_v31 = vor.u32 %v3813_v21, %v2755_v20  ;;  %v3075_v32 = vld [vmem:[#allocation2 + $0x3a8] sm:$0xf]  ;;  %v3878_v20 = vld [vmem:[#allocation2 + $0x340] sm:$0xf0] }
  0xae   :  { %1942 = vmatpush.bf16.msrb.mxu1 %v3052_v43  ;;  %1923 = vmatmul.bf16.vlgmr.msrb.gmra.mxu2 %v4180_v60  ;;  %v3985_v43 = vld [vmem:[#allocation2 + $0x69c] sm:$0xf]  ;;  %v1666_v3 = vpop.f32.mrf.mxu1  ;;  %v4243_v11 = vpop.f32.mrf.mxu3  ;;  %v3055_v50 = vld [vmem:[#allocation2 + $0x380] sm:$0xf] }
  0xaf   :  { %1897 = vmatmul.bf16.vlgmr.msrb.gmra.mxu3 %v4211_v35  ;;  %1967 = vmatpush.bf16.msra.mxu2 %v3392_v49  ;;  %v2949_v49 = vld [vmem:[#allocation2 + $0x2c4] sm:$0xf0]  ;;  %v3883_v3 = vld [vmem:[#allocation2 + $0x368] sm:$0xf0] }
  0xb0   :  { %1954 = vmatpush.bf16.msra.mxu3 %v3232_v40  ;;  %v3905_v40 = vld [vmem:[#allocation2 + $0x41c] sm:$0xf]  ;;  %v2952_v57 = vor.u32 %v3860_v48, %v2949_v49 }
  0xb1   :  { %1981 = vmatpush.bf16.msra.mxu0 %v3532_v56  ;;  %v3132_v54 = vor.u32 %v3905_v40, %v3129_v42  ;;  %v3900_v56 = vld [vmem:[#allocation2 + $0x3f4] sm:$0xf]  ;;  %v2895_v40 = vld [vmem:[#allocation2 + $0x240] sm:$0xf] }
  0xb2   :  { %1943 = vmatpush.bf16.msrb.mxu1 %v3032_v59  ;;  %v3109_v59 = vld [vmem:[#allocation2 + $0x404] sm:$0xf0]  ;;  %v3848_v42 = vld [vmem:[#allocation2 + $0x250] sm:$0xf0] }
  0xb3   :  { %1968 = vmatpush.bf16.msra.mxu2 %v3372_v0  ;;  %v3855_v0 = vld [vmem:[#allocation2 + $0x28c] sm:$0xf] }
  0xb4   :  { %1955 = vmatpush.bf16.msra.mxu3 %v3212_v55  ;;  %v3452_v55 = vor.u32 %v3985_v43, %v3449_v44  ;;  %v2932_v12 = vor.u32 %v3855_v0, %v2929_v1  ;;  %v3215_v43 = vld [vmem:[#allocation2 + $0x4c0] sm:$0xf]  ;;  %v3928_v44 = vld [vmem:[#allocation2 + $0x4d0] sm:$0xf0]  ;;  %v3056_v0 = vor.u32 %v3888_v51, %v3055_v50 }
  0xb5   :  { %1982 = vmatpush.bf16.msra.mxu0 %v3512_v8  ;;  %v3112_v8 = vor.u32 %v3900_v56, %v3109_v59  ;;  %v1679_v16 = vpop.f32.mrf.mxu2  ;;  %v2715_v56 = vld [vmem:[#allocation2 + $0xd8] sm:$0xf] }
  0xb6   :  { %1944 = vmatpush.bf16.msrb.mxu1 %v3012_v10  ;;  %v3895_v10 = vld [vmem:[#allocation2 + $0x3cc] sm:$0xf]  ;;  %v1692_v48 = vpop.f32.mrf.mxu3  ;;  %v2875_v59 = vld [vmem:[#allocation2 + $0x218] sm:$0xf]  ;;  %v3036_v16 = vor.u32 %v3883_v3, %v3035_v2 }
  0xb7   :  { %1969 = vmatpush.bf16.msra.mxu2 %v3352_v14  ;;  %v3975_v14 = vld [vmem:[#allocation2 + $0x64c] sm:$0xf]  ;;  %v3092_v26 = vor.u32 %v3895_v10, %v3089_v13  ;;  %v2876_v4 = vor.u32 %v3843_v61, %v2875_v59  ;;  %v3175_v13 = vld [vmem:[#allocation2 + $0x470] sm:$0xf]  ;;  %v2635_v61 = vld [vmem:[#allocation2 + $0x38] sm:$0xf] }
  0xb8   :  { %1956 = vmatpush.bf16.msra.mxu3 %v3192_v7  ;;  %v3569_v7 = vld [vmem:[#allocation2 + $0x79c] sm:$0xf0]  ;;  %v3903_v2 = vld [vmem:[#allocation2 + $0x408] sm:$0xf0] }
  0xb9   :  { %1983 = vmatpush.bf16.msra.mxu0 %v3492_v23  ;;  %v3572_v18 = vor.u32 %v4015_v6, %v3569_v7  ;;  %v3853_v23 = vld [vmem:[#allocation2 + $0x278] sm:$0xf0]  ;;  %v2695_v7 = vld [vmem:[#allocation2 + $0xb0] sm:$0xf] }
  0xba   :  { %1945 = vmatpush.bf16.msrb.mxu1 %v2992_v25  ;;  %v3933_v25 = vld [vmem:[#allocation2 + $0x4f8] sm:$0xf0] }
  0xbb   :  { %1970 = vmatpush.bf16.msra.mxu2 %v3332_v29  ;;  %v3412_v29 = vor.u32 %v3975_v14, %v3409_v15  ;;  %v3236_v36 = vor.u32 %v3933_v25, %v3235_v24  ;;  %v3918_v14 = vld [vmem:[#allocation2 + $0x480] sm:$0xf0]  ;;  %v2675_v24 = vld [vmem:[#allocation2 + $0x88] sm:$0xf]  ;;  %v3793_v25 = vld [vmem:[#allocation2 + $0x98] sm:$0xf0] }
  0xbc   :  { %1957 = vmatpush.bf16.msra.mxu3 %v3172_v22  ;;  %v2915_v22 = vld [vmem:[#allocation2 + $0x268] sm:$0xf] }
  0xbd   :  { %1984 = vmatpush.bf16.msra.mxu0 %v3472_v39  ;;  %v2916_v34 = vor.u32 %v3853_v23, %v2915_v22  ;;  %v3808_v39 = vld [vmem:[#allocation2 + $0x110] sm:$0xf0]  ;;  %v4246_v52 = vpop.f32.mrf.mxu2  ;;  %v3176_v23 = vor.u32 %v3918_v14, %v3175_v13  ;;  %v3778_v13 = vld [vmem:[#allocation2 + $0x20] sm:$0xf0]  ;;  %v2775_v14 = vld [vmem:[#allocation2 + $0x150] sm:$0xf] }
  0xbe   :  { %1946 = vmatpush.bf16.msrb.mxu1 %v2972_v41  ;;  %v3252_v41 = vor.u32 %v3935_v27, %v3249_v28  ;;  %v3833_v27 = vld [vmem:[#allocation2 + $0x1d8] sm:$0xf0]  ;;  %v3155_v28 = vld [vmem:[#allocation2 + $0x448] sm:$0xf] }
  0xbf   :  { %1971 = vmatpush.bf16.msra.mxu2 %v3312_v47  ;;  %v3076_v47 = vor.u32 %v3893_v33, %v3075_v32  ;;  %v2676_v32 = vor.u32 %v3793_v25, %v2675_v24  ;;  %v2995_v33 = vld [vmem:[#allocation2 + $0x308] sm:$0xf]  ;;  %v4013_v25 = vld [vmem:[#allocation2 + $0x778] sm:$0xf0] }
  0xc0   :  { %1958 = vmatpush.bf16.msra.mxu3 %v3152_v38  ;;  %v2735_v38 = vld [vmem:[#allocation2 + $0x100] sm:$0xf]  ;;  %v3555_v24 = vld [vmem:[#allocation2 + $0x768] sm:$0xf] }
  0xc1   :  { %1985 = vmatpush.bf16.msra.mxu0 %v3452_v55  ;;  %v2736_v49 = vor.u32 %v3808_v39, %v2735_v38  ;;  %v3216_v55 = vor.u32 %v3928_v44, %v3215_v43  ;;  %v2655_v39 = vld [vmem:[#allocation2 + $0x60] sm:$0xf]  ;;  %v3828_v43 = vld [vmem:[#allocation2 + $0x1b0] sm:$0xf0] }
  0xc2   :  { %1947 = vmatpush.bf16.msrb.mxu1 %v2952_v57  ;;  %v3803_v57 = vld [vmem:[#allocation2 + $0xe8] sm:$0xf0]  ;;  %v3135_v44 = vld [vmem:[#allocation2 + $0x420] sm:$0xf] }
  0xc3   :  { %1972 = vmatpush.bf16.msra.mxu2 %v3292_v63  ;;  %v3923_v63 = vld [vmem:[#allocation2 + $0x4a8] sm:$0xf0]  ;;  %v2716_v1 = vor.u32 %v3803_v57, %v2715_v56 }
  0xc4   :  { %1959 = vmatpush.bf16.msra.mxu3 %v3132_v54  ;;  %v2896_v54 = vor.u32 %v3848_v42, %v2895_v40  ;;  %v3196_v6 = vor.u32 %v3923_v63, %v3195_v62  ;;  %v3788_v40 = vld [vmem:[#allocation2 + $0x70] sm:$0xf0]  ;;  %v3783_v62 = vld [vmem:[#allocation2 + $0x48] sm:$0xf0]  ;;  %v2795_v63 = vld [vmem:[#allocation2 + $0x178] sm:$0xf] }
  0xc5   :  { %1986 = vmatpush.bf16.msra.mxu0 %v3432_v9  ;;  %v2855_v9 = vld [vmem:[#allocation2 + $0x1f0] sm:$0xf]  ;;  %v4251_v10 = vpop.f32.mrf.mxu0  ;;  %v1731_v21 = vpop.f32.mrf.mxu2  ;;  %v2656_v51 = vor.u32 %v3788_v40, %v2655_v39  ;;  %v4026_v39 = vld [vmem:[%s4437_s3 + $0x38] sm:$0xff]  ;;  %v3375_v40 = vld [vmem:[#allocation2 + $0x600] sm:$0xf] }
  0xc6   :  { %1948 = vmatpush.bf16.msrb.mxu1 %v2932_v12  ;;  %v3838_v12 = vld [vmem:[#allocation2 + $0x200] sm:$0xf0]  ;;  %v4253_v15 = vpop.f32.mrf.mxu1  ;;  %v3395_v21 = vld [vmem:[#allocation2 + $0x628] sm:$0xf] }
  0xc7   :  { %1973 = vmatpush.bf16.msra.mxu2 %v3272_v17  ;;  %v2856_v22 = vor.u32 %v3838_v12, %v2855_v9 }
  0xc8   :  { %1960 = vmatpush.bf16.msra.mxu3 %v3112_v8  ;;  %v3798_v8 = vld [vmem:[#allocation2 + $0xc0] sm:$0xf0] }
  0xc9   :  { %1949 = vmatmul.bf16.vlgmr.msrb.gmra.mxu1 %v4175_v53  ;;  %1987 = vmatpush.bf16.msra.mxu0 %v3412_v29  ;;  %v2696_v17 = vor.u32 %v3798_v8, %v2695_v7  ;;  %v3913_v29 = vld [vmem:[#allocation2 + $0x458] sm:$0xf0]  ;;  %v3863_v7 = vld [vmem:[#allocation2 + $0x2c8] sm:$0xf0]  ;;  %v2615_v8 = vld [vmem:[#allocation2 + $0x10] sm:$0xf] }
  0xca   :  { %2000 = vmatpush.bf16.msra.mxu1 %v3572_v18  ;;  %v3015_v18 = vld [vmem:[#allocation2 + $0x330] sm:$0xf]  ;;  %v3156_v38 = vor.u32 %v3913_v29, %v3155_v28  ;;  %v3858_v28 = vld [vmem:[#allocation2 + $0x2a0] sm:$0xf0] }
  0xcb   :  { %1974 = vmatpush.bf16.msra.mxu2 %v3252_v41  ;;  %v2815_v41 = vld [vmem:[#allocation2 + $0x1a0] sm:$0xf] }
  0xcc   :  { %1961 = vmatpush.bf16.msra.mxu3 %v3092_v26  ;;  %1988 = vmatmul.bf16.vlgmr.msra.gmra.mxu0 %v4211_v35  ;;  %v2835_v26 = vld [vmem:[#allocation2 + $0x1c8] sm:$0xf]  ;;  %v2816_v57 = vor.u32 %v3828_v43, %v2815_v41  ;;  %v3968_v43 = vld [vmem:[#allocation2 + $0x610] sm:$0xf0] }
  0xcd   :  { %2045 = vmatpush.bf16.msrb.mxu0 %v3236_v36  ;;  %v2836_v36 = vor.u32 %v3833_v27, %v2835_v26  ;;  %v1705_v48 = vpop.f32.mrf.mxu0  ;;  %v2616_v26 = vor.u32 %v3778_v13, %v2615_v8  ;;  %v2935_v27 = vld [vmem:[#allocation2 + $0x290] sm:$0xf]  ;;  %v3993_v13 = vld [vmem:[#allocation2 + $0x6d8] sm:$0xf0] }
  0xce   :  { %2019 = vmatpush.bf16.msrb.mxu1 %v2916_v34  ;;  %1975 = vmatmul.bf16.vlgmr.msra.gmra.mxu2 %v4209_v30  ;;  %v3873_v34 = vld [vmem:[#allocation2 + $0x318] sm:$0xf0]  ;;  %v4255_v42 = vpop.f32.mrf.mxu3  ;;  %v1718_v50 = vpop.f32.mrf.mxu1  ;;  %v2936_v41 = vor.u32 %v3858_v28, %v2935_v27 }
  0xcf   :  { %1962 = vmatmul.bf16.vlgmr.msra.gmra.mxu3 %v4193_v19  ;;  %2032 = vmatpush.bf16.msrb.mxu2 %v3076_v47  ;;  %v3908_v47 = vld [vmem:[#allocation2 + $0x430] sm:$0xf0] }
  0xd0   :  { %2006 = vmatpush.bf16.msrb.mxu3 %v2756_v31  ;;  %v3016_v31 = vor.u32 %v3878_v20, %v3015_v18  ;;  %v3136_v59 = vor.u32 %v3908_v47, %v3135_v44  ;;  %v3095_v18 = vld [vmem:[#allocation2 + $0x3d0] sm:$0xf]  ;;  %v3898_v20 = vld [vmem:[#allocation2 + $0x3e0] sm:$0xf0]  ;;  %v3535_v44 = vld [vmem:[#allocation2 + $0x740] sm:$0xf] }
  0xd1   :  { %2046 = vmatpush.bf16.msrb.mxu0 %v3216_v55  ;;  %v3868_v55 = vld [vmem:[#allocation2 + $0x2f0] sm:$0xf0]  ;;  %v4259_v56 = vpop.f32.mrf.mxu2 }
  0xd2   :  { %2020 = vmatpush.bf16.msrb.mxu1 %v2896_v54  ;;  %v2975_v54 = vld [vmem:[#allocation2 + $0x2e0] sm:$0xf]  ;;  %v4008_v47 = vld [vmem:[#allocation2 + $0x750] sm:$0xf0] }
  0xd3   :  { %2033 = vmatpush.bf16.msrb.mxu2 %v3056_v0  ;;  %v3823_v0 = vld [vmem:[#allocation2 + $0x188] sm:$0xf0]  ;;  %v2976_v3 = vor.u32 %v3868_v55, %v2975_v54  ;;  %v3536_v50 = vor.u32 %v4008_v47, %v3535_v44  ;;  %v3355_v54 = vld [vmem:[#allocation2 + $0x5d8] sm:$0xf] }
  0xd4   :  { %2007 = vmatpush.bf16.msrb.mxu3 %v2736_v49  ;;  %v2996_v49 = vor.u32 %v3873_v34, %v2995_v33  ;;  %v2796_v9 = vor.u32 %v3823_v0, %v2795_v63  ;;  %v3575_v33 = vld [vmem:[#allocation2 + $0x790] sm:$0xf]  ;;  %v4018_v34 = vld [vmem:[#allocation2 + $0x7a0] sm:$0xf0]  ;;  %v3963_v55 = vld [vmem:[#allocation2 + $0x5e8] sm:$0xf0] }
  0xd5   :  { %2047 = vmatpush.bf16.msrb.mxu0 %v3196_v6  ;;  %v2955_v6 = vld [vmem:[#allocation2 + $0x2b8] sm:$0xf]  ;;  %v3576_v48 = vor.u32 %v4018_v34, %v3575_v33  ;;  %v4024_v0 = vld [vmem:[%s4437_s3 + $0x28] sm:$0xff]  ;;  %v4021_v34 = vld [vmem:[%s4437_s3 + $0x10] sm:$0xff] }
  0xd6   :  { %2021 = vmatpush.bf16.msrb.mxu1 %v2876_v4  ;;  %v2636_v4 = vor.u32 %v3783_v62, %v2635_v61  ;;  %v4034_v61 = vld [vmem:[%s4437_s3 + $0x78] sm:$0xff]  ;;  %v3356_v62 = vor.u32 %v3963_v55, %v3355_v54  ;;  %v4020_v47 = vld [vmem:[%s4437_s3 + $0x8] sm:$0xff] }
  0xd7   :  { %2034 = vmatpush.bf16.msrb.mxu2 %v3036_v16  ;;  %v3818_v16 = vld [vmem:[#allocation2 + $0x160] sm:$0xf0] }
  0xd8   :  { %2008 = vmatpush.bf16.msrb.mxu3 %v2716_v1  ;;  %v3115_v1 = vld [vmem:[#allocation2 + $0x3f8] sm:$0xf] }
  0xd9   :  { %2048 = vmatpush.bf16.msrb.mxu0 %v3176_v23  ;;  %3580 = vmatmul.msk.bf16.vlgmr.msra.gmra.mxu1 %vm1638_vm0, %v4199_v45  ;;  %v3116_v12 = vor.u32 %v3903_v2, %v3115_v1  ;;  %v3973_v23 = vld [vmem:[#allocation2 + $0x638] sm:$0xf0]  ;;  %v1757_v29 = vpop.f32.mrf.mxu2  ;;  %v3335_v1 = vld [vmem:[#allocation2 + $0x5b0] sm:$0xf]  ;;  %v3958_v2 = vld [vmem:[#allocation2 + $0x5c0] sm:$0xf0] }
  0xda   :  { %2022 = vmatpush.bf16.msrb.mxu1 %v2856_v22  ;;  %v2956_v22 = vor.u32 %v3863_v7, %v2955_v6  ;;  %v355_v7 = vperm.slane %v4232_v58, 1  ;;  %v3336_v8 = vor.u32 %v3958_v2, %v3335_v1  ;;  %v4028_v1 = vld [vmem:[%s4437_s3 + $0x48] sm:$0xff] }
  0xdb   :  { %2035 = vmatpush.bf16.msrb.mxu2 %v3016_v31  ;;  %v2776_v31 = vor.u32 %v3818_v16, %v2775_v14  ;;  %v4032_v16 = vld [vmem:[%s4437_s3 + $0x68] sm:$0xff] }
  0xdc   :  { %2009 = vmatpush.bf16.msrb.mxu3 %v2696_v17  ;;  %v1744_v17 = vpop.f32.mrf.mxu3 }
  0xdd   :  { %2049 = vmatpush.bf16.msrb.mxu0 %v3156_v38  ;;  %v3556_v38 = vor.u32 %v4013_v25, %v3555_v24  ;;  %v1743_v17 = vadd.f32 %v4255_v42, %v355_v7  ;;  %v3948_v24 = vld [vmem:[#allocation2 + $0x570] sm:$0xf0]  ;;  %v4031_v42 = vld [vmem:[%s4437_s3 + $0x60] sm:$0xff]  ;;  %v4040_v7 = vld [vmem:[%s4437_s3 + $0xa8] sm:$0xff] }
  0xde   :  { %2023 = vmatpush.bf16.msrb.mxu1 %v2836_v36  ;;  %v3396_v36 = vor.u32 %v3973_v23, %v3395_v21  ;;  %v4022_v21 = vld [vmem:[%s4437_s3 + $0x18] sm:$0xff]  ;;  %v3988_v25 = vld [vmem:[#allocation2 + $0x6b0] sm:$0xf0] }
  0xdf   :  { %2036 = vmatpush.bf16.msrb.mxu2 %v2996_v49  ;;  %v3376_v49 = vor.u32 %v3968_v43, %v3375_v40 }
  0xe0   :  { %2010 = vmatpush.bf16.msrb.mxu3 %v2676_v32  ;;  %v3096_v32 = vor.u32 %v3898_v20, %v3095_v18 }
  0xe1   :  { %2050 = vmatpush.bf16.msrb.mxu0 %v3136_v59  ;;  %v4003_v59 = vld [vmem:[#allocation2 + $0x728] sm:$0xf0] }
  0xe2   :  { %2024 = vmatpush.bf16.msrb.mxu1 %v2816_v57  ;;  %v3515_v57 = vld [vmem:[#allocation2 + $0x718] sm:$0xf] }
  0xe3   :  { %2037 = vmatpush.bf16.msrb.mxu2 %v2976_v3  ;;  %v3516_v63 = vor.u32 %v4003_v59, %v3515_v57  ;;  %v3495_v3 = vld [vmem:[#allocation2 + $0x6f0] sm:$0xf] }
  0xe4   :  { %2011 = vmatpush.bf16.msrb.mxu3 %v2656_v51  ;;  %v4025_v51 = vld [vmem:[%s4437_s3 + $0x30] sm:$0xff] }
  0xe5   :  { %2051 = vmatpush.bf16.msrb.mxu0 %v3116_v12  ;;  %v3315_v12 = vld [vmem:[#allocation2 + $0x588] sm:$0xf]  ;;  %v4029_v57 = vld [vmem:[%s4437_s3 + $0x50] sm:$0xff] }
  0xe6   :  { %2025 = vmatpush.bf16.msrb.mxu1 %v2796_v9  ;;  %v1781_v6 = vpop.f32.mrf.mxu1 }
  0xe7   :  { %2038 = vmatpush.bf16.msrb.mxu2 %v2956_v22  ;;  %v3295_v22 = vld [vmem:[#allocation2 + $0x560] sm:$0xf] }
  0xe8   :  { %2012 = vmatpush.bf16.msrb.mxu3 %v2636_v4  ;;  %v3998_v4 = vld [vmem:[#allocation2 + $0x700] sm:$0xf0] }
  0xe9   :  { %2052 = vmatpush.bf16.msrb.mxu0 %v3096_v32  ;;  %v3496_v9 = vor.u32 %v3998_v4, %v3495_v3  ;;  %v3296_v32 = vor.u32 %v3948_v24, %v3295_v22  ;;  %v4041_v4 = vld [vmem:[%s4437_s3 + $0xb0] sm:$0xff] }
  0xea   :  { %2026 = vmatpush.bf16.msrb.mxu1 %v2776_v31  ;;  %v1756_v31 = vadd.f32 %v4259_v56, %v1743_v17  ;;  %v4030_v56 = vld [vmem:[%s4437_s3 + $0x58] sm:$0xff]  ;;  %v4036_v17 = vld [vmem:[%s4437_s3 + $0x88] sm:$0xff]  ;;  %v4049_v24 = vld [vmem:[%s4437_s3 + $0xf0] sm:$0xff] }
  0xeb   :  { %2039 = vmatpush.bf16.msrb.mxu2 %v2936_v41 }
  0xec   :  { %2013 = vmatpush.bf16.msrb.mxu3 %v2616_v26  ;;  %2053 = vmatmul.bf16.vlgmr.msrb.gmra.mxu0 %v4193_v19  ;;  %v4033_v19 = vld [vmem:[%s4437_s3 + $0x70] sm:$0xff] }
  0xed   :  { %2431 = vmatpush.bf16.msra.mxu0 %v4026_v39  ;;  %2027 = vmatmul.bf16.vlgmr.msrb.gmra.mxu1 %v4187_v5  ;;  %v1768_v5 = vpop.f32.mrf.mxu0  ;;  %v3983_v39 = vld [vmem:[#allocation2 + $0x688] sm:$0xf0] }
  0xee   :  { %2071 = vmatpush.bf16.msra.mxu1 %v3556_v38  ;;  %2040 = vmatmul.bf16.vlgmr.msrb.gmra.mxu2 %v4175_v53  ;;  %v4023_v53 = vld [vmem:[%s4437_s3 + $0x20] sm:$0xff]  ;;  %v1794_v23 = vpop.f32.mrf.mxu3  ;;  %v1783_v29 = vpop.f32.mrf.mxu1  ;;  %v3435_v38 = vld [vmem:[#allocation2 + $0x678] sm:$0xf]  ;;  %v1769_v41 = vadd.f32 %v1768_v5, %v1756_v31 }
  0xef   :  { %2091 = vmatpush.bf16.msra.mxu2 %v3576_v48  ;;  %2014 = vmatmul.bf16.vlgmr.msrb.gmra.mxu3 %v4180_v60  ;;  %v1678_v60 = vadd.f32 %v4241_v46, %v4239_v37  ;;  %v3953_v37 = vld [vmem:[#allocation2 + $0x598] sm:$0xf0]  ;;  %v3475_v46 = vld [vmem:[#allocation2 + $0x6c8] sm:$0xf]  ;;  %v3436_v44 = vor.u32 %v3983_v39, %v3435_v38  ;;  %v3255_v48 = vld [vmem:[#allocation2 + $0x510] sm:$0xf] }
  0xf0   :  { %2058 = vmatpush.bf16.msra.mxu3 %v3396_v36  ;;  %v3316_v18 = vor.u32 %v3953_v37, %v3315_v12  ;;  %v3476_v20 = vor.u32 %v3993_v13, %v3475_v46  ;;  %v3275_v36 = vld [vmem:[#allocation2 + $0x538] sm:$0xf]  ;;  %v1782_v55 = vadd.f32 %v1781_v6, %v1769_v41  ;;  %v4047_v29 = vld [vmem:[%s4437_s3 + $0xe0] sm:$0xff]  ;;  %v4045_v38 = vld [vmem:[%s4437_s3 + $0xd0] sm:$0xff] }
  0xf1   :  { %2432 = vmatpush.bf16.msra.mxu0 %v4025_v51  ;;  %v1691_v14 = vadd.f32 %v4243_v11, %v1678_v60  ;;  %v3455_v11 = vld [vmem:[#allocation2 + $0x6a0] sm:$0xf]  ;;  %v1807_v28 = vpop.f32.mrf.mxu2  ;;  %v3978_v51 = vld [vmem:[#allocation2 + $0x660] sm:$0xf0] }
  0xf2   :  { %2072 = vmatpush.bf16.msra.mxu1 %v3536_v50  ;;  %v3456_v33 = vor.u32 %v3988_v25, %v3455_v11  ;;  %v3415_v50 = vld [vmem:[#allocation2 + $0x650] sm:$0xf] }
  0xf3   :  { %2444 = vmatpush.bf16.msrb.mxu2 %v4034_v61  ;;  %v1704_v26 = vadd.f32 %v4251_v10, %v1691_v14  ;;  %v3943_v10 = vld [vmem:[#allocation2 + $0x548] sm:$0xf0]  ;;  %v1795_v61 = vadd.f32 %v1794_v23, %v1782_v55  ;;  %v4037_v14 = vld [vmem:[%s4437_s3 + $0x90] sm:$0xff]  ;;  %v4035_v23 = vld [vmem:[%s4437_s3 + $0x80] sm:$0xff] }
  0xf4   :  { %2059 = vmatpush.bf16.msra.mxu3 %v3376_v49  ;;  %v3276_v43 = vor.u32 %v3943_v10, %v3275_v36  ;;  %v3938_v49 = vld [vmem:[#allocation2 + $0x520] sm:$0xf0] }
  0xf5   :  { %2433 = vmatpush.bf16.msra.mxu0 %v4024_v0  ;;  %v1770_v27 = vpop.f32.mrf.mxu0  ;;  %v1717_v40 = vadd.f32 %v4253_v15, %v1704_v26  ;;  %v1808_v2 = vadd.f32 %v1807_v28, %v1795_v61 }
  0xf6   :  { %2073 = vmatpush.bf16.msra.mxu1 %v3516_v63  ;;  %v1796_v15 = vpop.f32.mrf.mxu3  ;;  %v3416_v63 = vor.u32 %v3978_v51, %v3415_v50  ;;  %v4048_v27 = vld [vmem:[%s4437_s3 + $0xe8] sm:$0xff]  ;;  %v357_v51 = vperm.slane %v4232_v58, 3 }
  0xf7   :  { %2445 = vmatpush.bf16.msrb.mxu2 %v4033_v19  ;;  %v1730_v54 = vadd.f32 %v4246_v52, %v1717_v40  ;;  %v4042_v52 = vld [vmem:[%s4437_s3 + $0xb8] sm:$0xff]  ;;  %v4027_v19 = vld [vmem:[%s4437_s3 + $0x40] sm:$0xff] }
  0xf8   :  { %2060 = vmatpush.bf16.msra.mxu3 %v3356_v62  ;;  %v3256_v62 = vor.u32 %v3938_v49, %v3255_v48  ;;  %v4043_v49 = vld [vmem:[%s4437_s3 + $0xc0] sm:$0xff] }
  0xf9   :  { %2434 = vmatpush.bf16.msra.mxu0 %v4023_v53  ;;  %v1809_v59 = vpop.f32.mrf.mxu2  ;;  %v2097_v0 = vmax.f32 %v1730_v54, 0.0 }
  0xfa   :  { %2074 = vmatpush.bf16.msra.mxu1 %v3496_v9 }
  0xfb   :  { %2446 = vmatpush.bf16.msrb.mxu2 %v4032_v16  ;;  %v2102_v60 = vpack.c.bf16 %v2097_v0, %v2097_v0 }
  0xfc   :  { %2061 = vmatpush.bf16.msra.mxu3 %v3336_v8 }
  0xfd   :  { %2435 = vmatpush.bf16.msra.mxu0 %v4022_v21 }
  0xfe   :  { %2075 = vmatpush.bf16.msra.mxu1 %v3476_v20  ;;  %3581 = vmatmul.msk.bf16.vlgmr.msra.gmra.mxu2 %vm1638_vm0, %v4199_v45  ;;  %v4019_v45 = vld [vmem:[%s4437_s3] sm:$0xff]  ;;  %v1820_v3 = vpop.f32.mrf.mxu3  ;;  %v4050_v20 = vld [vmem:[%s4437_s3 + $0xf8] sm:$0xff] }
  0xff   :  { %2447 = vmatpush.bf16.msrb.mxu2 %v4031_v42  ;;  %v1821_v5 = vadd.f32 %v1820_v3, %v1808_v2  ;;  %v4058_v2 = vld [vmem:[%s4437_s3 + $0x138] sm:$0xff] }
 0x100   :  { %2062 = vmatpush.bf16.msra.mxu3 %v3316_v18  ;;  %v356_v18 = vperm.slane %v4232_v58, 2 }
 0x101   :  { %2436 = vmatpush.bf16.msra.mxu0 %v4021_v34  ;;  %v2098_v6 = vmax.f32 %v1821_v5, 0.0  ;;  %v4046_v34 = vld [vmem:[%s4437_s3 + $0xd8] sm:$0xff] }
 0x102   :  { %2076 = vmatpush.bf16.msra.mxu1 %v3456_v33 }
 0x103   :  { %2448 = vmatpush.bf16.msrb.mxu2 %v4030_v56  ;;  %v2103_v8 = vpack.c.bf16 %v2098_v6, %v2098_v6 }
 0x104   :  { %2063 = vmatpush.bf16.msra.mxu3 %v3296_v32 }
 0x105   :  { %2437 = vmatpush.bf16.msra.mxu0 %v4020_v47  ;;  %v1859_v53 = vpop.f32.mrf.mxu0 }
 0x106   :  { %2077 = vmatpush.bf16.msra.mxu1 %v3436_v44  ;;  %v1833_v9 = vpop.f32.mrf.mxu1  ;;  %v1822_v12 = vpop.f32.mrf.mxu3  ;;  %v4044_v44 = vld [vmem:[%s4437_s3 + $0xc8] sm:$0xff] }
 0x107   :  { %2449 = vmatpush.bf16.msrb.mxu2 %v4029_v57  ;;  %v1834_v11 = vadd.f32 %v1833_v9, %v356_v18  ;;  %v4055_v12 = vld [vmem:[%s4437_s3 + $0x120] sm:$0xff] }
 0x108   :  { %2064 = vmatpush.bf16.msra.mxu3 %v3276_v43 }
 0x109   :  { %2438 = vmatpush.bf16.msra.mxu0 %v4019_v45 }
 0x10a   :  { %2078 = vmatpush.bf16.msra.mxu1 %v3416_v63 }
 0x10b   :  { %2450 = vmatpush.bf16.msrb.mxu2 %v4028_v1 }
 0x10c   :  { %2065 = vmatpush.bf16.msra.mxu3 %v3256_v62  ;;  %2439 = vmatmul.bf16.vlgmr.msra.gmra.mxu0 %v2102_v60 }
 0x10d   :  { %2079 = vmatmul.bf16.vlgmr.msra.gmra.mxu1 %v4211_v35  ;;  %v4038_v35 = vld [vmem:[%s4437_s3 + $0x98] sm:$0xff]  ;;  %v1861_v46 = vpop.f32.mrf.mxu0  ;;  %2483 = vmatpush.bf16.msrb.mxu0 %v4058_v2 }
 0x10e   :  { %v1835_v37 = vpop.f32.mrf.mxu1  ;;  %2470 = vmatpush.bf16.msrb.mxu1 %v4050_v20  ;;  %v4053_v46 = vld [vmem:[%s4437_s3 + $0x110] sm:$0xff]  ;;  %v4051_v20 = vld [vmem:[%s4437_s3 + $0x100] sm:$0xff] }
 0x10f   :  { %2066 = vmatmul.bf16.vlgmr.msra.gmra.mxu3 %v4209_v30  ;;  %2451 = vmatpush.bf16.msrb.mxu2 %v4027_v19  ;;  %v4039_v30 = vld [vmem:[%s4437_s3 + $0xa0] sm:$0xff]  ;;  %v4057_v19 = vld [vmem:[%s4437_s3 + $0x130] sm:$0xff] }
 0x110   :  { %2457 = vmatpush.bf16.msrb.mxu3 %v4042_v52 }
 0x111   :  { %v1872_v16 = vpop.f32.mrf.mxu2  ;;  %2484 = vmatpush.bf16.msrb.mxu0 %v4057_v19 }
 0x112   :  { %2452 = vmatmul.bf16.vlgmr.msrb.gmra.mxu2 %v2103_v8  ;;  %v1846_v13 = vpop.f32.mrf.mxu3  ;;  %2471 = vmatpush.bf16.msrb.mxu1 %v4049_v24 }
 0x113   :  { %v1847_v26 = vadd.f32 %v1846_v13, %v1834_v11 }
 0x114   :  { %2458 = vmatpush.bf16.msrb.mxu3 %v4041_v4 }
 0x115   :  { %v1911_v21 = vpop.f32.mrf.mxu0  ;;  %v1860_v28 = vadd.f32 %v1859_v53, %v1847_v26 }
 0x116   :  { %2472 = vmatpush.bf16.msrb.mxu1 %v4048_v27 }
 0x117   :  { %v1873_v31 = vadd.f32 %v1872_v16, %v1860_v28 }
 0x118   :  { %2459 = vmatpush.bf16.msrb.mxu3 %v4040_v7  ;;  %v4056_v7 = vld [vmem:[%s4437_s3 + $0x128] sm:$0xff] }
 0x119   :  { %v1874_v25 = vpop.f32.mrf.mxu2  ;;  %2485 = vmatpush.bf16.msrb.mxu0 %v4056_v7 }
 0x11a   :  { %v1848_v22 = vpop.f32.mrf.mxu3  ;;  %2473 = vmatpush.bf16.msrb.mxu1 %v4047_v29 }
 0x11c   :  { %2460 = vmatpush.bf16.msrb.mxu3 %v4039_v30  ;;  %v4054_v30 = vld [vmem:[%s4437_s3 + $0x118] sm:$0xff] }
 0x11d   :  { %v1913_v42 = vpop.f32.mrf.mxu0  ;;  %2486 = vmatpush.bf16.msrb.mxu0 %v4055_v12 }
 0x11e   :  { %2474 = vmatpush.bf16.msrb.mxu1 %v4046_v34 }
 0x120   :  { %2461 = vmatpush.bf16.msrb.mxu3 %v4038_v35 }
 0x121   :  { %2487 = vmatpush.bf16.msrb.mxu0 %v4054_v30 }
 0x122   :  { %2475 = vmatpush.bf16.msrb.mxu1 %v4045_v38 }
 0x124   :  { %2462 = vmatpush.bf16.msrb.mxu3 %v4037_v14  ;;  %v4052_v14 = vld [vmem:[%s4437_s3 + $0x108] sm:$0xff] }
 0x125   :  { %2488 = vmatpush.bf16.msrb.mxu0 %v4053_v46 }
 0x126   :  { %v1885_v32 = vpop.f32.mrf.mxu1  ;;  %2476 = vmatpush.bf16.msrb.mxu1 %v4044_v44 }
 0x127   :  { %v1886_v36 = vadd.f32 %v1885_v32, %v1873_v31  ;;  %v4071_v32 = vld [vmem:[%s4438_s4] ss:$0 sm:$0xff] }
 0x128   :  { %2463 = vmatpush.bf16.msrb.mxu3 %v4036_v17 }
 0x129   :  { %v1937_v33 = vpop.f32.mrf.mxu0  ;;  %2489 = vmatpush.bf16.msrb.mxu0 %v4052_v14 }
 0x12a   :  { %2477 = vmatpush.bf16.msrb.mxu1 %v4043_v49  ;;  %v4065_v49 = vld [vmem:[%s4439_s5 + $0x30] sm:$0xff] }
 0x12c   :  { %2464 = vmatpush.bf16.msrb.mxu3 %v4035_v23  ;;  %v358_v23 = vperm.slane %v4232_v58, 4 }
 0x12d   :  { %2490 = vmatpush.bf16.msrb.mxu0 %v4051_v20 }
 0x12e   :  { %v1887_v41 = vpop.f32.mrf.mxu1 }
 0x131   :  { %v1924_v56 = vpop.f32.mrf.mxu2  ;;  %v1939_v43 = vpop.f32.mrf.mxu0 }
 0x132   :  { %v1898_v10 = vpop.f32.mrf.mxu3  ;;  %v1925_v54 = vadd.f32 %v1924_v56, %v357_v51  ;;  %v4064_v51 = vld [vmem:[%s4439_s5 + $0x28] sm:$0xff] }
 0x133   :  { %v1899_v39 = vadd.f32 %v1898_v10, %v1886_v36 }
 0x134   :  { %v1938_v57 = vadd.f32 %v1937_v33, %v1925_v54  ;;  %v4063_v54 = vld [vmem:[%s4439_s5 + $0x20] sm:$0xff] }
 0x135   :  { %v1912_v40 = vadd.f32 %v1911_v21, %v1899_v39 }
 0x137   :  { %v2099_v47 = vmax.f32 %v1912_v40, 0.0 }
 0x139   :  { %v2104_v48 = vpack.c.bf16 %v2099_v47, %v2099_v47  ;;  %v1926_v50 = vpop.f32.mrf.mxu2 }
 0x13a   :  { %v1900_v15 = vpop.f32.mrf.mxu3 }
 0x13b   :  { %2465 = vmatmul.bf16.vlgmr.msrb.gmra.mxu3 %v2104_v48  ;;  %v4066_v15 = vld [vmem:[%s4439_s5 + $0x38] sm:$0xff] }
 0x13c   :  { %2566 = vmatpush.bf16.msra.mxu2 %v4066_v15 }
 0x140   :  { %2567 = vmatpush.bf16.msra.mxu2 %v4065_v49 }
 0x144   :  { %2568 = vmatpush.bf16.msra.mxu2 %v4064_v51 }
 0x146   :  { %v1950_v55 = vpop.f32.mrf.mxu1 }
 0x147   :  { %v1951_v61 = vadd.f32 %v1950_v55, %v1938_v57  ;;  %v4062_v55 = vld [vmem:[%s4439_s5 + $0x18] sm:$0xff]  ;;  %v4061_v57 = vld [vmem:[%s4439_s5 + $0x10] sm:$0xff] }
 0x148   :  { %2569 = vmatpush.bf16.msra.mxu2 %v4063_v54 }
 0x149   :  { %v1989_v59 = vpop.f32.mrf.mxu0 }
 0x14c   :  { %2570 = vmatpush.bf16.msra.mxu2 %v4062_v55 }
 0x14e   :  { %v1952_v62 = vpop.f32.mrf.mxu1 }
 0x14f   :  { %v4060_v62 = vld [vmem:[%s4439_s5 + $0x8] sm:$0xff] }
 0x150   :  { %2571 = vmatpush.bf16.msra.mxu2 %v4061_v57 }
 0x151   :  { %v1991_v52 = vpop.f32.mrf.mxu0  ;;  %v1976_v0 = vpop.f32.mrf.mxu2 }
 0x152   :  { %v1963_v63 = vpop.f32.mrf.mxu3 }
 0x153   :  { %v1964_v45 = vadd.f32 %v1963_v63, %v1951_v61  ;;  %v4059_v63 = vld [vmem:[%s4439_s5] sm:$0xff] }
 0x154   :  { %2572 = vmatpush.bf16.msra.mxu2 %v4060_v62 }
 0x155   :  { %v1977_v1 = vadd.f32 %v1976_v0, %v1964_v45 }
 0x156   :  { %v2002_v4 = vpop.f32.mrf.mxu1 }
 0x157   :  { %v1990_v3 = vadd.f32 %v1989_v59, %v1977_v1 }
 0x158   :  { %2573 = vmatpush.bf16.msra.mxu2 %v4059_v63 }
 0x159   :  { %v2003_v5 = vadd.f32 %v2002_v4, %v1990_v3  ;;  %v1978_v8 = vpop.f32.mrf.mxu2  ;;  %v4072_v4 = vld [vmem:[%s4440_s6] ss:$0 sm:$0xff] }
 0x15a   :  { %v1965_v60 = vpop.f32.mrf.mxu3 }
 0x15b   :  { %v2100_v6 = vmax.f32 %v2003_v5, 0.0 }
 0x15d   :  { %v2105_v9 = vpack.c.bf16 %v2100_v6, %v2100_v6 }
 0x15e   :  { %v2004_v53 = vpop.f32.mrf.mxu1 }
 0x15f   :  { %2478 = vmatmul.bf16.vlgmr.msrb.gmra.mxu1 %v2105_v9 }
 0x169   :  { %v2054_v37 = vpop.f32.mrf.mxu0 }
 0x16a   :  { %v2028_v35 = vpop.f32.mrf.mxu1 }
 0x171   :  { %v2041_v16 = vpop.f32.mrf.mxu2  ;;  %v2056_v18 = vpop.f32.mrf.mxu0 }
 0x172   :  { %v2015_v13 = vpop.f32.mrf.mxu3  ;;  %v2030_v17 = vpop.f32.mrf.mxu1 }
 0x173   :  { %v2016_v24 = vadd.f32 %v2015_v13, %v358_v23 }
 0x175   :  { %v2029_v25 = vadd.f32 %v2028_v35, %v2016_v24 }
 0x177   :  { %v2042_v42 = vadd.f32 %v2041_v16, %v2029_v25 }
 0x179   :  { %v2043_v22 = vpop.f32.mrf.mxu2  ;;  %v2055_v29 = vadd.f32 %v2054_v37, %v2042_v42 }
 0x17a   :  { %v2017_v21 = vpop.f32.mrf.mxu3 }
 0x181   :  { %v2093_v11 = vpop.f32.mrf.mxu2 }
 0x189   :  { %v2440_v27 = vpop.f32.mrf.mxu0  ;;  %v2095_v28 = vpop.f32.mrf.mxu2 }
 0x18a   :  { %v2080_v26 = vpop.f32.mrf.mxu1  ;;  %v2441_v38 = vadd.f32 %v4071_v32, %v2440_v27 }
 0x191   :  { %v2442_v10 = vpop.f32.mrf.mxu0 }
 0x192   :  { %v2067_v31 = vpop.f32.mrf.mxu3  ;;  %v2082_v34 = vpop.f32.mrf.mxu1 }
 0x193   :  { %v2068_v33 = vadd.f32 %v2067_v31, %v2055_v29 }
 0x195   :  { %v2081_v36 = vadd.f32 %v2080_v26, %v2068_v33  ;;  %v2453_v58 = vpop.f32.mrf.mxu2 }
 0x196   :  { %v2454_v41 = vadd.f32 %v2453_v58, %v2441_v38 }
 0x197   :  { %v2094_v39 = vadd.f32 %v2093_v11, %v2081_v36 }
 0x199   :  { %v2101_v40 = vmax.f32 %v2094_v39, 0.0 }
 0x19a   :  { %v2069_v56 = vpop.f32.mrf.mxu3 }
 0x19b   :  { %v2106_v43 = vpack.c.bf16 %v2101_v40, %v2101_v40 }
 0x19d   :  { %2491 = vmatmul.bf16.vlgmr.msrb.gmra.mxu0 %v2106_v43  ;;  %v2455_v44 = vpop.f32.mrf.mxu2 }
 0x1be   :  { %v2466_v47 = vpop.f32.mrf.mxu3 }
 0x1bf   :  { %v2467_v48 = vadd.f32 %v2466_v47, %v2454_v41 }
 0x1c6   :  { %v2468_v50 = vpop.f32.mrf.mxu3 }
 0x1dc   :  { %v2479_v59 = vpop.f32.mrf.mxu1 }
 0x1dd   :  { %v2480_v45 = vadd.f32 %v2479_v59, %v2467_v48 }
 0x1e4   :  { %v2481_v61 = vpop.f32.mrf.mxu1 }
 0x21a   :  { %v2492_v52 = vpop.f32.mrf.mxu0 }
 0x21b   :  { %v2493_v0 = vadd.f32 %v2492_v52, %v2480_v45 }
 0x21d   :  { %v2496_v1 = vmax.f32 %v2493_v0, 0.0 }
 0x21f   :  { %v2497_v2 = vpack.c.bf16 %v2496_v1, %v2496_v1 }
 0x221   :  { %2574 = vmatmul.bf16.vlgmr.msra.gmra.mxu2 %v2497_v2 }
 0x222   :  { %v2494_v3 = vpop.f32.mrf.mxu0 }
 0x2a4   :  { %v2575_v60 = vpop.f32.mrf.mxu2 }
 0x2a5   :  { %v2576_v5 = vadd.f32 %v4072_v4, %v2575_v60 }
 0x2a7   :  { %2579 = vst [vmem:[#allocation5] sm:$0xff] %v2576_v5 }
 0x2a8   :  { %2590 = dma.vmem_to_hbm [thread:$0]  %s2586_s18, 128, %s2588_s0, [#allocation4]  }
 0x2ac   :  { %v2577_v19 = vpop.f32.mrf.mxu2 }
 0x2ad   :  { %4123 = dma.done.wait [#allocation4], 128  }
 0x2ae   :  { %4124 = vsyncadd [#allocation4], 4294967168 }
 0x2af   :  { %2595 = vsyncpa [#allocation3], 1 }
 0x2b0   :  { %2596 = vsyncpa [#allocation4], 1 }

</bundles_post_ra>
